<compile_context>
chip_gen: v6e
topology: v6e:2x2x1
jax: 0.10.0
libtpu: 0.0.40
codegen_flags: <defaults>
</compile_context>

<pallas_src>
import math

import jax
import jax.numpy as jnp
from jax.experimental import pallas as pl
from jax.experimental.pallas import tpu as pltpu


# ----------------------------------------------------------------------------
# Kernel A: coordinate MLP -> offset only (routing is recomputed in kernel B).
# ----------------------------------------------------------------------------
def _offset_kernel(coord_ref, w1_ref, b1_ref, w2_ref, b2_ref, wo_ref, bo_ref,
                   off_ref):
    x = coord_ref[...]                                                   # (tP, 8)
    h1 = jnp.maximum(
        jnp.dot(x, w1_ref[...], preferred_element_type=jnp.float32) + b1_ref[...], 0.0)
    h2 = jnp.maximum(
        jnp.dot(h1, w2_ref[...], preferred_element_type=jnp.float32) + b2_ref[...], 0.0)
    off_ref[...] = (jnp.dot(h2, wo_ref[...],
                            preferred_element_type=jnp.float32) + bo_ref[...])


def offset_mlp(coord_pad, params, tile_p):
    Pp = coord_pad.shape[0]
    assert Pp % tile_p == 0

    def res(shape):
        return pl.BlockSpec(shape, lambda i, _s=shape: (0,) * len(_s))

    return pl.pallas_call(
        _offset_kernel,
        out_shape=jax.ShapeDtypeStruct((Pp, 2), jnp.float32),
        grid=(Pp // tile_p,),
        in_specs=[
            pl.BlockSpec((tile_p, 8), lambda i: (i, 0)),
            res((8, 64)), res((1, 64)),
            res((64, 64)), res((1, 64)),
            res((64, 2)), res((1, 2)),
        ],
        # NOTE: (tP, 2) output is lane-narrow (masked store) but tiny; the big lane-narrow
        # offender (routing) has been removed entirely.
        out_specs=pl.BlockSpec((tile_p, 2), lambda i: (i, 0)),
        compiler_params=pltpu.CompilerParams(dimension_semantics=("parallel",)),
    )(coord_pad, params["w1p"], params["b1"], params["w2"], params["b2"],
      params["wo"], params["bo"])


# ----------------------------------------------------------------------------
# Kernel B: fused routing-MLP + per-pixel expert mixture + residual.
#   r_exp[p, e*C8+k] = sigmoid(h2 @ wr + br)[p, e]           (column-duplicated head)
#   mid   = fea @ Wc_all                                     (tP, E*C8)
#   comp  = blocksum_e(r_exp * mid)  (replicated per block)  via Q (E*C8, E*C8) 0/1 matrix
#   out   = (r_exp * comp_rep) @ We_all + fea                (tP, C)
# ----------------------------------------------------------------------------
def _expert_kernel(coord_ref, fea_ref,
                   w1_ref, b1_ref, w2_ref, b2_ref, wrx_ref, brx_ref,
                   wc_ref, q_ref, we_ref, out_ref):
    x = coord_ref[...]                                                   # (tP, 8)
    h1 = jnp.maximum(
        jnp.dot(x, w1_ref[...], preferred_element_type=jnp.float32) + b1_ref[...], 0.0)
    h2 = jnp.maximum(
        jnp.dot(h1, w2_ref[...], preferred_element_type=jnp.float32) + b2_ref[...], 0.0)
    z = jnp.dot(h2, wrx_ref[...], preferred_element_type=jnp.float32) + brx_ref[...]
    r_exp = pl.reciprocal(1.0 + jnp.exp(-z), approx=True)                # (tP, E*C8)

    fea_bf = fea_ref[0]                                                  # (tP, C) bf16
    mid = jnp.dot(fea_bf, wc_ref[...],
                  preferred_element_type=jnp.float32)                    # (tP, E*C8)
    mid = mid * r_exp
    comp_rep = jnp.dot(mid, q_ref[...],
                       preferred_element_type=jnp.float32)               # (tP, E*C8)
    comp_scaled = comp_rep * r_exp
    out = jnp.dot(comp_scaled.astype(jnp.bfloat16), we_ref[...],
                  preferred_element_type=jnp.float32)                    # (tP, C)
    out_ref[0] = (out + fea_bf.astype(jnp.float32)).astype(out_ref.dtype)


def expert_apply(coord_pad, fea_pad, params, tile_p):
    B, Pp, C = fea_pad.shape
    EC8 = params["wrx"].shape[1]
    assert Pp % tile_p == 0

    def res(shape):
        return pl.BlockSpec(shape, lambda b, i, _s=shape: (0,) * len(_s))

    return pl.pallas_call(
        _expert_kernel,
        out_shape=jax.ShapeDtypeStruct((B, Pp, C), jnp.float32),
        grid=(B, Pp // tile_p),
        in_specs=[
            pl.BlockSpec((tile_p, 8), lambda b, i: (i, 0)),
            pl.BlockSpec((1, tile_p, C), lambda b, i: (b, i, 0)),
            res((8, 64)), res((1, 64)),
            res((64, 64)), res((1, 64)),
            res((64, EC8)), res((1, EC8)),
            res((C, EC8)), res((EC8, EC8)), res((EC8, C)),
        ],
        out_specs=pl.BlockSpec((1, tile_p, C), lambda b, i: (b, i, 0)),
        compiler_params=pltpu.CompilerParams(
            dimension_semantics=("parallel", "parallel")),
    )(coord_pad, fea_pad,
      params["w1p"], params["b1"], params["w2"], params["b2"],
      params["wrx"], params["brx"],
      params["wc_all"], params["q"], params["we_all"])


# ----------------------------------------------------------------------------
# Glue: coordinate construction + bilinear grid_sample (plain JAX, channel-last).
# ----------------------------------------------------------------------------
def build_coord(H, W, scale, scale2):
    ih = jnp.arange(H, dtype=jnp.float32)
    iw = jnp.arange(W, dtype=jnp.float32)
    coor_h = (ih + 0.5) / scale - jnp.floor((ih + 0.5) / scale + 0.001) - 0.5
    coor_w = (iw + 0.5) / scale2 - jnp.floor((iw + 0.5) / scale2 + 0.001) - 0.5
    ones = jnp.ones((H, W), jnp.float32)
    coord = jnp.stack(
        [ones / scale2,
         ones / scale,
         jnp.broadcast_to(coor_h[:, None], (H, W)),
         jnp.broadcast_to(coor_w[None, :], (H, W))], axis=-1)            # (H, W, 4)
    return coord.reshape(H * W, 4)


def grid_sample_bilinear_nhwc(x_nhwc, off_hw, scale, scale2):
    """Matches lbasicsr grid_sample(): base grid built with align_corners=True
    normalization, then F.grid_sample(mode=bilinear, padding_mode=zeros,
    align_corners=False).  Gathers directly into channel-last (B, H, W, C).
    NOTE: h == 1 or w == 1 would divide by zero (same as the PyTorch code)."""
    # TODO(synk): data-dependent bilinear gather stays as an XLA gather; a Pallas
    # version would need a manual row-DMA gather (paged-attention style).
    b, h, w, c = x_nhwc.shape
    H = round(scale * h)
    W = round(scale2 * w)

    jj = jnp.arange(W, dtype=jnp.float32)
    ii = jnp.arange(H, dtype=jnp.float32)
    gx = ((jj + 0.5) / scale2 - 0.5) * 2.0 / (w - 1) - 1.0
    gy = ((ii + 0.5) / scale - 0.5) * 2.0 / (h - 1) - 1.0
    gx = jnp.broadcast_to(gx[None, :], (H, W)) + off_hw[..., 0] * (2.0 / (w - 1))
    gy = jnp.broadcast_to(gy[:, None], (H, W)) + off_hw[..., 1] * (2.0 / (h - 1))

    # un-normalize with align_corners=False (F.grid_sample default)
    ix = ((gx + 1.0) * w - 1.0) / 2.0
    iy = ((gy + 1.0) * h - 1.0) / 2.0
    ix0 = jnp.floor(ix)
    iy0 = jnp.floor(iy)
    wx1 = ix - ix0
    wy1 = iy - iy0
    wx0 = 1.0 - wx1
    wy0 = 1.0 - wy1

    def gather(iy_, ix_):
        valid = ((ix_ >= 0) & (ix_ <= w - 1) &
                 (iy_ >= 0) & (iy_ <= h - 1)).astype(x_nhwc.dtype)       # (H, W)
        ixc = jnp.clip(ix_, 0, w - 1).astype(jnp.int32)
        iyc = jnp.clip(iy_, 0, h - 1).astype(jnp.int32)
        v = x_nhwc[:, iyc, ixc, :]                                       # (B, H, W, C)
        return v * valid[None, :, :, None]

    out = (gather(iy0, ix0) * (wy0 * wx0)[None, :, :, None]
           + gather(iy0, ix0 + 1.0) * (wy0 * wx1)[None, :, :, None]
           + gather(iy0 + 1.0, ix0) * (wy1 * wx0)[None, :, :, None]
           + gather(iy0 + 1.0, ix0 + 1.0) * (wy1 * wx1)[None, :, :, None])
    return out                                                           # (B, H, W, C)


# ----------------------------------------------------------------------------
# Full SA_upsample forward (Pallas path).
# ----------------------------------------------------------------------------
def sa_upsample(x, scale, scale2, params, tile_p=512):
    B, C, h, w = x.shape
    H = round(scale * h)
    W = round(scale2 * w)
    P = H * W
    Pp = ((P + tile_p - 1) // tile_p) * tile_p

    coord = build_coord(H, W, scale, scale2)                             # (P, 4)
    coord_pad = jnp.pad(coord, ((0, Pp - P), (0, 4)))                    # (Pp, 8)

    off_pad = offset_mlp(coord_pad, params, tile_p)                      # (Pp, 2)
    off_hw = off_pad[:P].reshape(H, W, 2)

    # only the (small) LR input gets a layout change; the HR feature map is
    # gathered straight into channel-last pixel-major layout.
    x_nhwc = jnp.transpose(x.astype(jnp.float32), (0, 2, 3, 1))          # (B, h, w, C)
    fea = grid_sample_bilinear_nhwc(x_nhwc, off_hw, scale, scale2)       # (B, H, W, C)
    fea_pix = fea.reshape(B, P, C).astype(jnp.bfloat16)
    fea_pad = jnp.pad(fea_pix, ((0, 0), (0, Pp - P), (0, 0)))            # (B, Pp, C)

    out_pad = expert_apply(coord_pad, fea_pad, params, tile_p)           # (B, Pp, C) f32
    out = out_pad[:, :P].reshape(B, H, W, C).transpose(0, 3, 1, 2)       # (B, C, H, W)
    return out


# ----------------------------------------------------------------------------
# Pure-JAX reference (mirrors the PyTorch op order, all f32) for a sanity check.
# ----------------------------------------------------------------------------
def sa_upsample_reference(x, scale, scale2, raw):
    B, C, h, w = x.shape
    H = round(scale * h)
    W = round(scale2 * w)
    coord = build_coord(H, W, scale, scale2)                             # (P, 4)
    h1 = jax.nn.relu(coord @ raw["w1"] + raw["b1"])
    h2 = jax.nn.relu(h1 @ raw["w2"] + raw["b2"])
    routing = jax.nn.sigmoid(h2 @ raw["wr"] + raw["br"])                 # (P, E)
    off = h2 @ raw["wo"] + raw["bo"]                                     # (P, 2)
    off_hw = off.reshape(H, W, 2)

    E = routing.shape[1]
    C8 = C // 8
    Wc_pix = (routing @ raw["wc"].reshape(E, -1)).reshape(H, W, C8, C)
    We_pix = (routing @ raw["we"].reshape(E, -1)).reshape(H, W, C, C8)

    x_nhwc = jnp.transpose(x.astype(jnp.float32), (0, 2, 3, 1))
    fea = grid_sample_bilinear_nhwc(x_nhwc, off_hw, scale, scale2)       # (B, H, W, C)
    comp = jnp.einsum("hwkc,bhwc->bhwk", Wc_pix, fea)
    out = jnp.einsum("hwck,bhwk->bhwc", We_pix, comp) + fea
    return jnp.transpose(out, (0, 3, 1, 2))


# ----------------------------------------------------------------------------
# Parameter init (shapes from SA_upsample.__init__) + kernel-layout preparation.
# ----------------------------------------------------------------------------
def init_params(key, channels, num_experts=4):
    C = channels
    C8 = C // 8
    E = num_experts
    ks = jax.random.split(key, 10)

    def u(k, shape, fan_in):
        bound = 1.0 / math.sqrt(fan_in)
        return jax.random.uniform(k, shape, jnp.float32, -bound, bound)

    return dict(
        w1=u(ks[0], (4, 64), 4), b1=u(ks[1], (1, 64), 4),
        w2=u(ks[2], (64, 64), 64), b2=u(ks[3], (1, 64), 64),
        wr=u(ks[4], (64, E), 64), br=u(ks[5], (1, E), 64),
        wo=u(ks[6], (64, 2), 64), bo=u(ks[7], (1, 2), 64),
        wc=u(ks[8], (E, C8, C), C),      # per-expert compress (C//8, C)
        we=u(ks[9], (E, C, C8), C8))     # per-expert expand   (C, C//8)


def prepare_params(raw, channels, num_experts=4):
    C = channels
    C8 = C // 8
    E = num_experts
    EC8 = E * C8
    # coord MLP first layer padded to K=8 (sublane-aligned)
    w1p = jnp.concatenate([raw["w1"], jnp.zeros((4, 64), jnp.float32)], axis=0)
    # routing head with each expert column duplicated C8 times (sigmoid commutes)
    wrx = jnp.repeat(raw["wr"], C8, axis=1)                              # (64, EC8)
    brx = jnp.repeat(raw["br"], C8, axis=1)                              # (1, EC8)
    # concatenated expert weights for the two big MXU matmuls (bf16)
    wc_all = jnp.transpose(raw["wc"], (2, 0, 1)).reshape(C, EC8).astype(jnp.bfloat16)
    we_all = jnp.transpose(raw["we"], (0, 2, 1)).reshape(EC8, C).astype(jnp.bfloat16)
    # 0/1 block-sum / block-replicate matrix: Q[i, j] = (i % C8 == j % C8)
    q = (jnp.arange(EC8)[:, None] % C8 == jnp.arange(EC8)[None, :] % C8).astype(jnp.float32)
    return dict(w1p=w1p, b1=raw["b1"], w2=raw["w2"], b2=raw["b2"],
                wo=raw["wo"], bo=raw["bo"],
                wrx=wrx, brx=brx, wc_all=wc_all, we_all=we_all, q=q)


if __name__ == "__main__":
    key = jax.random.PRNGKey(0)
    kx, kp = jax.random.split(key)

    B, C, h, w = 2, 16, 16, 16
    scale, scale2 = 1.5, 1.5

    x = jax.random.normal(kx, (B, C, h, w), jnp.float32)
    raw = init_params(kp, C, num_experts=4)
    params = prepare_params(raw, C, num_experts=4)

    out = sa_upsample(x, scale, scale2, params, tile_p=512)
    out = jax.block_until_ready(out)

    H, W = round(scale * h), round(scale2 * w)
    assert out.shape == (B, C, H, W)
    assert bool(jnp.all(jnp.isfinite(out)))

    ref = sa_upsample_reference(x, scale, scale2, raw)
    assert bool(jnp.allclose(out, ref, atol=5e-2, rtol=5e-2)), \
        float(jnp.max(jnp.abs(out - ref)))

    print("KERNEL_OK")
</pallas_src>

<mosaic_0001>
module attributes {stable_mosaic.version = 11 : i64} {
  func.func @_offset_kernel(%arg0: i32, %arg1: memref<512x8xf32, #tpu.memory_space<vmem>>, %arg2: memref<8x64xf32, #tpu.memory_space<vmem>>, %arg3: memref<1x64xf32, #tpu.memory_space<vmem>>, %arg4: memref<64x64xf32, #tpu.memory_space<vmem>>, %arg5: memref<1x64xf32, #tpu.memory_space<vmem>>, %arg6: memref<64x2xf32, #tpu.memory_space<vmem>>, %arg7: memref<1x2xf32, #tpu.memory_space<vmem>>, %arg8: memref<512x2xf32, #tpu.memory_space<vmem>>) attributes {dimension_semantics = [#tpu.dimension_semantics<parallel>], iteration_bounds = array<i64: 2>, scalar_prefetch = 0 : i64, scratch_operands = 0 : i64, tpu.core_type = #tpu.core_type<tc>, window_params = [{transform_indices = @transform_0, window_bounds = array<i64: 512, 8>}, {pipeline_mode = #tpu.pipeline_mode<synchronous>, transform_indices = @transform_1, window_bounds = array<i64: 8, 64>}, {pipeline_mode = #tpu.pipeline_mode<synchronous>, transform_indices = @transform_2, window_bounds = array<i64: 1, 64>}, {pipeline_mode = #tpu.pipeline_mode<synchronous>, transform_indices = @transform_3, window_bounds = array<i64: 64, 64>}, {pipeline_mode = #tpu.pipeline_mode<synchronous>, transform_indices = @transform_4, window_bounds = array<i64: 1, 64>}, {pipeline_mode = #tpu.pipeline_mode<synchronous>, transform_indices = @transform_5, window_bounds = array<i64: 64, 2>}, {pipeline_mode = #tpu.pipeline_mode<synchronous>, transform_indices = @transform_6, window_bounds = array<i64: 1, 2>}, {transform_indices = @transform_7, window_bounds = array<i64: 512, 2>}]} {
    %c0 = arith.constant 0 : index
    %c0_0 = arith.constant 0 : index
    %0 = vector.load %arg1[%c0, %c0_0] : memref<512x8xf32, #tpu.memory_space<vmem>>, vector<512x8xf32>
    %c0_1 = arith.constant 0 : index
    %c0_2 = arith.constant 0 : index
    %1 = vector.load %arg2[%c0_1, %c0_2] : memref<8x64xf32, #tpu.memory_space<vmem>>, vector<8x64xf32>
    %cst = arith.constant dense<0.000000e+00> : vector<512x64xf32>
    %2 = tpu.matmul %0, %1, %cst {dimension_numbers = #tpu.dot_dimension_numbers<[1], [0], [0], [1], [0, 0, 1, 1], [], []>} : vector<512x8xf32>, vector<8x64xf32>, vector<512x64xf32> -> vector<512x64xf32>
    %c0_3 = arith.constant 0 : index
    %c0_4 = arith.constant 0 : index
    %3 = vector.load %arg3[%c0_3, %c0_4] : memref<1x64xf32, #tpu.memory_space<vmem>>, vector<1x64xf32>
    %4 = vector.broadcast %3 : vector<1x64xf32> to vector<512x64xf32>
    %5 = arith.addf %2, %4 : vector<512x64xf32>
    %cst_5 = arith.constant 0.000000e+00 : f32
    %6 = vector.broadcast %cst_5 : f32 to vector<512x64xf32>
    %7 = arith.maximumf %5, %6 : vector<512x64xf32>
    %c0_6 = arith.constant 0 : index
    %c0_7 = arith.constant 0 : index
    %8 = vector.load %arg4[%c0_6, %c0_7] : memref<64x64xf32, #tpu.memory_space<vmem>>, vector<64x64xf32>
    %cst_8 = arith.constant dense<0.000000e+00> : vector<512x64xf32>
    %9 = tpu.matmul %7, %8, %cst_8 {dimension_numbers = #tpu.dot_dimension_numbers<[1], [0], [0], [1], [0, 0, 1, 1], [], []>} : vector<512x64xf32>, vector<64x64xf32>, vector<512x64xf32> -> vector<512x64xf32>
    %c0_9 = arith.constant 0 : index
    %c0_10 = arith.constant 0 : index
    %10 = vector.load %arg5[%c0_9, %c0_10] : memref<1x64xf32, #tpu.memory_space<vmem>>, vector<1x64xf32>
    %11 = vector.broadcast %10 : vector<1x64xf32> to vector<512x64xf32>
    %12 = arith.addf %9, %11 : vector<512x64xf32>
    %cst_11 = arith.constant 0.000000e+00 : f32
    %13 = vector.broadcast %cst_11 : f32 to vector<512x64xf32>
    %14 = arith.maximumf %12, %13 : vector<512x64xf32>
    %c0_12 = arith.constant 0 : index
    %c0_13 = arith.constant 0 : index
    %15 = vector.load %arg6[%c0_12, %c0_13] : memref<64x2xf32, #tpu.memory_space<vmem>>, vector<64x2xf32>
    %cst_14 = arith.constant dense<0.000000e+00> : vector<512x2xf32>
    %16 = tpu.matmul %14, %15, %cst_14 {dimension_numbers = #tpu.dot_dimension_numbers<[1], [0], [0], [1], [0, 0, 1, 1], [], []>} : vector<512x64xf32>, vector<64x2xf32>, vector<512x2xf32> -> vector<512x2xf32>
    %c0_15 = arith.constant 0 : index
    %c0_16 = arith.constant 0 : index
    %17 = vector.load %arg7[%c0_15, %c0_16] : memref<1x2xf32, #tpu.memory_space<vmem>>, vector<1x2xf32>
    %18 = vector.broadcast %17 : vector<1x2xf32> to vector<512x2xf32>
    %19 = arith.addf %16, %18 : vector<512x2xf32>
    %c0_17 = arith.constant 0 : index
    %c0_18 = arith.constant 0 : index
    %20 = vector.load %arg8[%c0_17, %c0_18] : memref<512x2xf32, #tpu.memory_space<vmem>>, vector<512x2xf32>
    tpu.vector_store %arg8[%c0_17, %c0_18], %19 {strides = array<i32>} : memref<512x2xf32, #tpu.memory_space<vmem>>, vector<512x2xf32>,
    return
  }
  func.func @transform_0(%arg0: i32) -> (i32, i32) {
    %c0_i32 = arith.constant 0 : i32
    %c0_i32_0 = arith.constant 0 : i32
    return %arg0, %c0_i32 : i32, i32
  }
  func.func @transform_1(%arg0: i32) -> (i32, i32) {
    %c0_i32 = arith.constant 0 : i32
    %c0_i32_0 = arith.constant 0 : i32
    %c0_i32_1 = arith.constant 0 : i32
    return %c0_i32, %c0_i32_0 : i32, i32
  }
  func.func @transform_2(%arg0: i32) -> (i32, i32) {
    %c0_i32 = arith.constant 0 : i32
    %c0_i32_0 = arith.constant 0 : i32
    %c0_i32_1 = arith.constant 0 : i32
    return %c0_i32, %c0_i32_0 : i32, i32
  }
  func.func @transform_3(%arg0: i32) -> (i32, i32) {
    %c0_i32 = arith.constant 0 : i32
    %c0_i32_0 = arith.constant 0 : i32
    %c0_i32_1 = arith.constant 0 : i32
    return %c0_i32, %c0_i32_0 : i32, i32
  }
  func.func @transform_4(%arg0: i32) -> (i32, i32) {
    %c0_i32 = arith.constant 0 : i32
    %c0_i32_0 = arith.constant 0 : i32
    %c0_i32_1 = arith.constant 0 : i32
    return %c0_i32, %c0_i32_0 : i32, i32
  }
  func.func @transform_5(%arg0: i32) -> (i32, i32) {
    %c0_i32 = arith.constant 0 : i32
    %c0_i32_0 = arith.constant 0 : i32
    %c0_i32_1 = arith.constant 0 : i32
    return %c0_i32, %c0_i32_0 : i32, i32
  }
  func.func @transform_6(%arg0: i32) -> (i32, i32) {
    %c0_i32 = arith.constant 0 : i32
    %c0_i32_0 = arith.constant 0 : i32
    %c0_i32_1 = arith.constant 0 : i32
    return %c0_i32, %c0_i32_0 : i32, i32
  }
  func.func @transform_7(%arg0: i32) -> (i32, i32) {
    %c0_i32 = arith.constant 0 : i32
    %c0_i32_0 = arith.constant 0 : i32
    return %arg0, %c0_i32 : i32, i32
  }
}

</mosaic_0001>

<bundles_post_ra>
// kernel: tpu_custom_call.1
= control target key start
LH: loop header
LB: loop body
LE: loop exit
PB: predicated region body
PF: predicated region fallthrough
CT: control target
= control target key end

     0   :  { %s3161_s24 = smov 0   ;;  %s3885_s0 = inlined_call_operand.vmem [shape: f32[1024,8], index: 0, kind: input, shape index: {}]   ;;  %s3886_s1 = inlined_call_operand.vmem [shape: f32[8,64], index: 1, kind: input, shape index: {}]   ;;  %s3887_s2 = inlined_call_operand.vmem [shape: f32[1,64], index: 2, kind: input, shape index: {}]   ;;  %s3888_s3 = inlined_call_operand.vmem [shape: f32[64,64], index: 3, kind: input, shape index: {}]   ;;  %s3889_s4 = inlined_call_operand.vmem [shape: f32[1,64], index: 4, kind: input, shape index: {}]   ;;  %s3890_s5 = inlined_call_operand.vmem [shape: f32[64,2], index: 5, kind: input, shape index: {}]   ;;  %s3891_s6 = inlined_call_operand.vmem [shape: f32[1,2], index: 6, kind: input, shape index: {}]   ;;  %s3892_s7 = inlined_call_operand.vmem [shape: f32[1024,2], index: 7, kind: output, shape index: {}]  }
   0x1 LB: > { %s2366_s25 = sadd.s32 4294967295, %s3119_s24   ;;  %p2370_p0 = scmp.ge.s32.totalorder %s3119_s24, 1  ;;  %s3119_s24 = sphi %s3161_s24, %s17_s24  }
   0x2   : > { %p238_p1 = scmp.lt.s32.totalorder %s3119_s24, 3 }
   0x4   : > { %p239_p2 = pnand %p2370_p0, %p238_p1 }
   0x5   : > { %s2371_s28 = sshll.u32 (!%p239_p2), %s2366_s25, 6 }
   0x6   : > { %242 = sbr.rel (%p239_p2) target bundleno = 738 (0x2e2), region = 48  ;;  %p271_p3 = scmp.lt.s32.totalorder (!%p239_p2), %s2371_s28, 127 }
   0xb   : > { %v346_v0 = vld [vmem:[%s3886_s1] sm:$0xff]  ;;  %v1003_v1 = vld [vmem:[%s3888_s3 + $0x38] sm:$0xff]  ;;  %s3894_s28 = smov (!%p271_p3, %s2371_s28), 127  ;;  %vm354_vm0 = vcmask 64512   ;;  %v1002_v10 = vld [vmem:[%s3888_s3 + $0x30] sm:$0xff]  ;;  %vm1011_vm1 = vcmask 523264  }
   0xc   : > { %2781 = vmatprep.subr.mxu0 %v346_v0  ;;  %3103 = vmatprep.subr.mxu1 %v346_v0  ;;  %s2372_s8 = sshll.u32 %s3894_s28, 3  ;;  %v1001_v16 = vld [vmem:[%s3888_s3 + $0x28] sm:$0xff]  ;;  %v1000_v19 = vld [vmem:[%s3888_s3 + $0x20] sm:$0xff]  ;;  %v999_v22 = vld [vmem:[%s3888_s3 + $0x18] sm:$0xff]  ;;  %vm2245_vm2 = vcmask 15360  }
   0xd   : > { %2782 = vmatpush3.msra.mxu0 %v346_v0  ;;  %3104 = vmatpush3.msra.mxu1 %v346_v0  ;;  %s3183_s11 = scalar_lea.vmem %s3885_s0, %s2372_s8  ;;  %v998_v25 = vld [vmem:[%s3888_s3 + $0x10] sm:$0xff]  ;;  %v997_v28 = vld [vmem:[%s3888_s3 + $0x8] sm:$0xff]  ;;  %v996_v31 = vld [vmem:[%s3888_s3] sm:$0xff]  ;;  %s3688_s10 = scalar_lea.vmem %s3892_s7, %s2372_s8 }
   0xe   : > { %2879 = vmatprep.subr.mxu1 %v1003_v1  ;;  %v282_v2 = vld [vmem:[%s3183_s11] sm:$0xff]  ;;  %v283_v3 = vld [vmem:[%s3183_s11 + $0x8] sm:$0xff]  ;;  %v284_v4 = vld [vmem:[%s3183_s11 + $0x10] sm:$0xff] }
   0xf   : > { %2783 = vmatprep.mubr.msk.f32.mxu0 %vm354_vm0, %v282_v2  ;;  %v285_v5 = vld [vmem:[%s3183_s11 + $0x18] sm:$0xff]  ;;  %v286_v6 = vld [vmem:[%s3183_s11 + $0x20] sm:$0xff]  ;;  %v287_v7 = vld [vmem:[%s3183_s11 + $0x28] sm:$0xff] }
  0x10   : > { %2784 = vmatmul.mubr.msk.f32.vlgmr.msra.gmra.mxu0 %vm354_vm0, %v283_v3  ;;  %v288_v8 = vld [vmem:[%s3183_s11 + $0x30] sm:$0xff]  ;;  %v314_v9 = vld [vmem:[%s3183_s11 + $0x100] sm:$0xff]  ;;  %v289_v11 = vld [vmem:[%s3183_s11 + $0x38] sm:$0xff] }
  0x11   : > { %2786 = vmatprep.mubr.msk.f32.mxu0 %vm354_vm0, %v284_v4  ;;  %2831 = vmatprep.mubr.msk.f32.mxu1 %vm354_vm0, %v314_v9  ;;  %v315_v12 = vld [vmem:[%s3183_s11 + $0x108] sm:$0xff]  ;;  %v316_v13 = vld [vmem:[%s3183_s11 + $0x110] sm:$0xff]  ;;  %v290_v14 = vld [vmem:[%s3183_s11 + $0x40] sm:$0xff] }
  0x12   : > { %2832 = vmatmul.mubr.msk.f32.vlgmr.msra.gmra.mxu1 %vm354_vm0, %v315_v12  ;;  %v317_v15 = vld [vmem:[%s3183_s11 + $0x118] sm:$0xff]  ;;  %v318_v17 = vld [vmem:[%s3183_s11 + $0x120] sm:$0xff]  ;;  %v291_v18 = vld [vmem:[%s3183_s11 + $0x48] sm:$0xff] }
  0x13   : > { %2834 = vmatprep.mubr.msk.f32.mxu1 %vm354_vm0, %v316_v13  ;;  %2880 = vmatpush3.msra.mxu1 %v1003_v1  ;;  %v292_v20 = vld [vmem:[%s3183_s11 + $0x50] sm:$0xff]  ;;  %v319_v21 = vld [vmem:[%s3183_s11 + $0x128] sm:$0xff]  ;;  %v293_v24 = vld [vmem:[%s3183_s11 + $0x58] sm:$0xff] }
  0x14   : > { %2787 = vmatmul.mubr.msk.f32.gmra.mxu0 %vm354_vm0, %v285_v5  ;;  %2881 = vmatprep.subr.mxu1 %v1002_v10  ;;  %v320_v23 = vld [vmem:[%s3183_s11 + $0x130] sm:$0xff]  ;;  %v294_v26 = vld [vmem:[%s3183_s11 + $0x60] sm:$0xff]  ;;  %v321_v27 = vld [vmem:[%s3183_s11 + $0x138] sm:$0xff] }
  0x15   : > { %2789 = vmatprep.mubr.msk.f32.mxu0 %vm354_vm0, %v286_v6  ;;  %2882 = vmatpush3.msra.mxu1 %v1002_v10  ;;  %v322_v29 = vld [vmem:[%s3183_s11 + $0x140] sm:$0xff]  ;;  %v295_v30 = vld [vmem:[%s3183_s11 + $0x68] sm:$0xff]  ;;  %v296_v32 = vld [vmem:[%s3183_s11 + $0x70] sm:$0xff] }
  0x16   : > { %2835 = vmatmul.mubr.msk.f32.gmra.mxu1 %vm354_vm0, %v317_v15  ;;  %2883 = vmatprep.subr.mxu1 %v1001_v16  ;;  %v323_v33 = vld [vmem:[%s3183_s11 + $0x148] sm:$0xff]  ;;  %v324_v34 = vld [vmem:[%s3183_s11 + $0x150] sm:$0xff]  ;;  %v297_v35 = vld [vmem:[%s3183_s11 + $0x78] sm:$0xff] }
  0x17   : > { %2837 = vmatprep.mubr.msk.f32.mxu1 %vm354_vm0, %v318_v17  ;;  %2884 = vmatpush3.msra.mxu1 %v1001_v16  ;;  %v298_v36 = vld [vmem:[%s3183_s11 + $0x80] sm:$0xff]  ;;  %v325_v37 = vld [vmem:[%s3183_s11 + $0x158] sm:$0xff]  ;;  %v299_v39 = vld [vmem:[%s3183_s11 + $0x88] sm:$0xff] }
  0x18   : > { %2790 = vmatmul.mubr.msk.f32.gmra.mxu0 %vm354_vm0, %v287_v7  ;;  %2885 = vmatprep.subr.mxu1 %v1000_v19  ;;  %v326_v38 = vld [vmem:[%s3183_s11 + $0x160] sm:$0xff]  ;;  %v300_v40 = vld [vmem:[%s3183_s11 + $0x90] sm:$0xff]  ;;  %v327_v41 = vld [vmem:[%s3183_s11 + $0x168] sm:$0xff] }
  0x19   : > { %2792 = vmatprep.mubr.msk.f32.mxu0 %vm354_vm0, %v288_v8  ;;  %2886 = vmatpush3.msra.mxu1 %v1000_v19  ;;  %v328_v42 = vld [vmem:[%s3183_s11 + $0x170] sm:$0xff]  ;;  %v301_v43 = vld [vmem:[%s3183_s11 + $0x98] sm:$0xff]  ;;  %v302_v44 = vld [vmem:[%s3183_s11 + $0xa0] sm:$0xff] }
  0x1a   : > { %2838 = vmatmul.mubr.msk.f32.gmra.mxu1 %vm354_vm0, %v319_v21  ;;  %2887 = vmatprep.subr.mxu1 %v999_v22  ;;  %v329_v45 = vld [vmem:[%s3183_s11 + $0x178] sm:$0xff]  ;;  %v330_v46 = vld [vmem:[%s3183_s11 + $0x180] sm:$0xff]  ;;  %v303_v47 = vld [vmem:[%s3183_s11 + $0xa8] sm:$0xff] }
  0x1b   : > { %2840 = vmatprep.mubr.msk.f32.mxu1 %vm354_vm0, %v320_v23  ;;  %2888 = vmatpush3.msra.mxu1 %v999_v22  ;;  %v304_v48 = vld [vmem:[%s3183_s11 + $0xb0] sm:$0xff]  ;;  %v331_v49 = vld [vmem:[%s3183_s11 + $0x188] sm:$0xff]  ;;  %v305_v51 = vld [vmem:[%s3183_s11 + $0xb8] sm:$0xff] }
  0x1c   : > { %2793 = vmatmul.mubr.msk.f32.gmra.mxu0 %vm354_vm0, %v289_v11  ;;  %2889 = vmatprep.subr.mxu1 %v998_v25  ;;  %v332_v50 = vld [vmem:[%s3183_s11 + $0x190] sm:$0xff]  ;;  %v306_v52 = vld [vmem:[%s3183_s11 + $0xc0] sm:$0xff]  ;;  %v333_v53 = vld [vmem:[%s3183_s11 + $0x198] sm:$0xff] }
  0x1d   : > { %2795 = vmatprep.mubr.msk.f32.mxu0 %vm354_vm0, %v290_v14  ;;  %2890 = vmatpush3.msra.mxu1 %v998_v25  ;;  %v334_v54 = vld [vmem:[%s3183_s11 + $0x1a0] sm:$0xff]  ;;  %v307_v55 = vld [vmem:[%s3183_s11 + $0xc8] sm:$0xff]  ;;  %v308_v56 = vld [vmem:[%s3183_s11 + $0xd0] sm:$0xff] }
  0x1e   : > { %2841 = vmatmul.mubr.msk.f32.gmra.mxu1 %vm354_vm0, %v321_v27  ;;  %2891 = vmatprep.subr.mxu1 %v997_v28  ;;  %v335_v57 = vld [vmem:[%s3183_s11 + $0x1a8] sm:$0xff]  ;;  %v336_v58 = vld [vmem:[%s3183_s11 + $0x1b0] sm:$0xff]  ;;  %v309_v59 = vld [vmem:[%s3183_s11 + $0xd8] sm:$0xff] }
  0x1f   : > { %2843 = vmatprep.mubr.msk.f32.mxu1 %vm354_vm0, %v322_v29  ;;  %2892 = vmatpush3.msra.mxu1 %v997_v28  ;;  %v310_v60 = vld [vmem:[%s3183_s11 + $0xe0] sm:$0xff]  ;;  %v337_v61 = vld [vmem:[%s3183_s11 + $0x1b8] sm:$0xff]  ;;  %v311_v63 = vld [vmem:[%s3183_s11 + $0xe8] sm:$0xff] }
  0x20   : > { %2796 = vmatmul.mubr.msk.f32.gmra.mxu0 %vm354_vm0, %v291_v18  ;;  %2893 = vmatprep.subr.mxu1 %v996_v31  ;;  %v338_v62 = vld [vmem:[%s3183_s11 + $0x1c0] sm:$0xff]  ;;  %v312_v0 = vld [vmem:[%s3183_s11 + $0xf0] sm:$0xff]  ;;  %v339_v1 = vld [vmem:[%s3183_s11 + $0x1c8] sm:$0xff] }
  0x21   : > { %2798 = vmatprep.mubr.msk.f32.mxu0 %vm354_vm0, %v292_v20  ;;  %2894 = vmatpush3.msra.mxu1 %v996_v31  ;;  %v340_v2 = vld [vmem:[%s3183_s11 + $0x1d0] sm:$0xff]  ;;  %v313_v3 = vld [vmem:[%s3183_s11 + $0xf8] sm:$0xff]  ;;  %v342_v5 = vld [vmem:[%s3183_s11 + $0x1e0] sm:$0xff] }
  0x22   : > { %2844 = vmatmul.mubr.msk.f32.gmra.mxu1 %vm354_vm0, %v323_v33  ;;  %v341_v4 = vld [vmem:[%s3183_s11 + $0x1d8] sm:$0xff]  ;;  %v343_v6 = vld [vmem:[%s3183_s11 + $0x1e8] sm:$0xff]  ;;  %v344_v7 = vld [vmem:[%s3183_s11 + $0x1f0] sm:$0xff] }
  0x23   : > { %2846 = vmatprep.mubr.msk.f32.mxu1 %vm354_vm0, %v324_v34  ;;  %v345_v8 = vld [vmem:[%s3183_s11 + $0x1f8] sm:$0xff]  ;;  %v3337_v9 = vld [vmem:[%s3887_s2] ss:$0 sm:$0xff]  ;;  %v1659_v16 = vld [vmem:[%s3890_s5 + $0x30] sm:$0xff] }
  0x24   : > { %2799 = vmatmul.mubr.msk.f32.gmra.mxu0 %vm354_vm0, %v293_v24  ;;  %v1660_v15 = vld [vmem:[%s3890_s5 + $0x38] sm:$0xff]  ;;  %v1658_v21 = vld [vmem:[%s3890_s5 + $0x28] sm:$0xff]  ;;  %v1657_v24 = vld [vmem:[%s3890_s5 + $0x20] sm:$0xff] }
  0x25   : > { %2801 = vmatprep.mubr.msk.f32.mxu0 %vm354_vm0, %v294_v26  ;;  %2991 = vmatprep.subr.mxu0 %v1660_v15  ;;  %v1655_v34 = vld [vmem:[%s3890_s5 + $0x10] sm:$0xff] }
  0x26   : > { %2847 = vmatmul.mubr.msk.f32.gmra.mxu1 %vm354_vm0, %v325_v37  ;;  %2992 = vmatpush3.msra.mxu0 %v1660_v15 }
  0x27   : > { %2849 = vmatprep.mubr.msk.f32.mxu1 %vm354_vm0, %v326_v38  ;;  %2993 = vmatprep.subr.mxu0 %v1659_v16 }
  0x28   : > { %2802 = vmatmul.mubr.msk.f32.gmra.mxu0 %vm354_vm0, %v295_v30  ;;  %v1656_v30 = vld [vmem:[%s3890_s5 + $0x18] sm:$0xff] }
  0x29   : > { %2804 = vmatprep.mubr.msk.f32.mxu0 %vm354_vm0, %v296_v32  ;;  %2994 = vmatpush3.msra.mxu0 %v1659_v16 }
  0x2a   : > { %2850 = vmatmul.mubr.msk.f32.gmra.mxu1 %vm354_vm0, %v327_v41  ;;  %2995 = vmatprep.subr.mxu0 %v1658_v21 }
  0x2b   : > { %2852 = vmatprep.mubr.msk.f32.mxu1 %vm354_vm0, %v328_v42  ;;  %2996 = vmatpush3.msra.mxu0 %v1658_v21 }
  0x2c   : > { %2805 = vmatmul.mubr.msk.f32.gmra.mxu0 %vm354_vm0, %v297_v35  ;;  %2997 = vmatprep.subr.mxu0 %v1657_v24 }
  0x2d   : > { %2807 = vmatprep.mubr.msk.f32.mxu0 %vm354_vm0, %v298_v36  ;;  %2998 = vmatpush3.msra.mxu0 %v1657_v24 }
  0x2e   : > { %2853 = vmatmul.mubr.msk.f32.gmra.mxu1 %vm354_vm0, %v329_v45  ;;  %2999 = vmatprep.subr.mxu0 %v1656_v30 }
  0x2f   : > { %2855 = vmatprep.mubr.msk.f32.mxu1 %vm354_vm0, %v330_v46  ;;  %3000 = vmatpush3.msra.mxu0 %v1656_v30 }
  0x30   : > { %2808 = vmatmul.mubr.msk.f32.gmra.mxu0 %vm354_vm0, %v299_v39  ;;  %3001 = vmatprep.subr.mxu0 %v1655_v34 }
  0x31   : > { %2810 = vmatprep.mubr.msk.f32.mxu0 %vm354_vm0, %v300_v40  ;;  %v1654_v40 = vld [vmem:[%s3890_s5 + $0x8] sm:$0xff]  ;;  %3002 = vmatpush3.msra.mxu0 %v1655_v34 }
  0x32   : > { %2856 = vmatmul.mubr.msk.f32.gmra.mxu1 %vm354_vm0, %v331_v49  ;;  %3003 = vmatprep.subr.mxu0 %v1654_v40 }
  0x33   : > { %2858 = vmatprep.mubr.msk.f32.mxu1 %vm354_vm0, %v332_v50  ;;  %3004 = vmatpush3.msra.mxu0 %v1654_v40 }
  0x34   : > { %2811 = vmatmul.mubr.msk.f32.gmra.mxu0 %vm354_vm0, %v301_v43 }
  0x35   : > { %2813 = vmatprep.mubr.msk.f32.mxu0 %vm354_vm0, %v302_v44  ;;  %v1653_v44 = vld [vmem:[%s3890_s5] sm:$0xff] }
  0x36   : > { %2859 = vmatmul.mubr.msk.f32.gmra.mxu1 %vm354_vm0, %v333_v53  ;;  %3005 = vmatprep.subr.mxu0 %v1653_v44 }
  0x37   : > { %2861 = vmatprep.mubr.msk.f32.mxu1 %vm354_vm0, %v334_v54  ;;  %3006 = vmatpush3.msra.mxu0 %v1653_v44 }
  0x38   : > { %2814 = vmatmul.mubr.msk.f32.gmra.mxu0 %vm354_vm0, %v303_v47 }
  0x39   : > { %2816 = vmatprep.mubr.msk.f32.mxu0 %vm354_vm0, %v304_v48 }
  0x3a   : > { %2862 = vmatmul.mubr.msk.f32.gmra.mxu1 %vm354_vm0, %v335_v57 }
  0x3b   : > { %2864 = vmatprep.mubr.msk.f32.mxu1 %vm354_vm0, %v336_v58 }
  0x3c   : > { %2817 = vmatmul.mubr.msk.f32.gmra.mxu0 %vm354_vm0, %v305_v51 }
  0x3d   : > { %2819 = vmatprep.mubr.msk.f32.mxu0 %vm354_vm0, %v306_v52 }
  0x3e   : > { %2865 = vmatmul.mubr.msk.f32.gmra.mxu1 %vm354_vm0, %v337_v61 }
  0x3f   : > { %2867 = vmatprep.mubr.msk.f32.mxu1 %vm354_vm0, %v338_v62 }
  0x40   : > { %2820 = vmatmul.mubr.msk.f32.gmra.mxu0 %vm354_vm0, %v307_v55 }
  0x41   : > { %2822 = vmatprep.mubr.msk.f32.mxu0 %vm354_vm0, %v308_v56 }
  0x42   : > { %2868 = vmatmul.mubr.msk.f32.gmra.mxu1 %vm354_vm0, %v339_v1 }
  0x43   : > { %2870 = vmatprep.mubr.msk.f32.mxu1 %vm354_vm0, %v340_v2 }
  0x44   : > { %2823 = vmatmul.mubr.msk.f32.gmra.mxu0 %vm354_vm0, %v309_v59 }
  0x45   : > { %2825 = vmatprep.mubr.msk.f32.mxu0 %vm354_vm0, %v310_v60 }
  0x46   : > { %2871 = vmatmul.mubr.msk.f32.gmra.mxu1 %vm354_vm0, %v341_v4 }
  0x47   : > { %2873 = vmatprep.mubr.msk.f32.mxu1 %vm354_vm0, %v342_v5 }
  0x48   : > { %2826 = vmatmul.mubr.msk.f32.gmra.mxu0 %vm354_vm0, %v311_v63 }
  0x49   : > { %2828 = vmatprep.mubr.msk.f32.mxu0 %vm354_vm0, %v312_v0 }
  0x4a   : > { %2874 = vmatmul.mubr.msk.f32.gmra.mxu1 %vm354_vm0, %v343_v6 }
  0x4b   : > { %2876 = vmatprep.mubr.msk.f32.mxu1 %vm354_vm0, %v344_v7 }
  0x4c   : > { %2829 = vmatmul.mubr.msk.f32.gmra.mxu0 %vm354_vm0, %v313_v3 }
  0x4e   : > { %2877 = vmatmul.mubr.msk.f32.gmra.mxu1 %vm354_vm0, %v345_v8 }
  0xd0   : > { %v2785_v10 = vpop.f32.mrf.mxu0 }
  0xd1   : > { %v619_v11 = vadd.f32 %v2785_v10, %v3337_v9 }
  0xd2   : > { %v613_v12 = vpop.f32.mrf.mxu0  ;;  %v3358_v29 = vpop.f32.mrf.mxu1 }
  0xd3   : > { %v614_v13 = vadd.f32 %v3337_v9, %v613_v12  ;;  %v933_v18 = vmax.f32 %v619_v11, 0.0 }
  0xd4   : > { %v2788_v14 = vpop.f32.mrf.mxu0  ;;  %v3366_v33 = vpop.f32.mrf.mxu1 }
  0xd5   : > { %v932_v17 = vmax.f32 %v614_v13, 0.0  ;;  %v629_v19 = vadd.f32 %v2788_v14, %v3337_v9 }
  0xd6   : > { %v623_v20 = vpop.f32.mrf.mxu0  ;;  %v3372_v39 = vpop.f32.mrf.mxu1 }
  0xd7   : > { %v624_v22 = vadd.f32 %v3337_v9, %v623_v20  ;;  %2895 = vmatprep.mubr.msk.f32.mxu1 %vm1011_vm1, %v932_v17  ;;  %v935_v26 = vmax.f32 %v629_v19, 0.0 }
  0xd8   : > { %v2791_v23 = vpop.f32.mrf.mxu0  ;;  %2896 = vmatmul.mubr.msk.f32.vlgmr.msra.gmra.mxu1 %vm1011_vm1, %v933_v18  ;;  %v3380_v43 = vpop.f32.mrf.mxu1 }
  0xd9   : > { %v934_v25 = vmax.f32 %v624_v22, 0.0  ;;  %v639_v27 = vadd.f32 %v2791_v23, %v3337_v9 }
  0xda   : > { %v633_v28 = vpop.f32.mrf.mxu0  ;;  %v3386_v49 = vpop.f32.mrf.mxu1 }
  0xdb   : > { %v634_v31 = vadd.f32 %v3337_v9, %v633_v28  ;;  %2898 = vmatprep.mubr.msk.f32.mxu1 %vm1011_vm1, %v934_v25  ;;  %v937_v36 = vmax.f32 %v639_v27, 0.0 }
  0xdc   : > { %v2794_v32 = vpop.f32.mrf.mxu0  ;;  %2899 = vmatmul.mubr.msk.f32.gmra.mxu1 %vm1011_vm1, %v935_v26  ;;  %v3391_v52 = vpop.f32.mrf.mxu1 }
  0xdd   : > { %v936_v35 = vmax.f32 %v634_v31, 0.0  ;;  %v649_v37 = vadd.f32 %v2794_v32, %v3337_v9 }
  0xde   : > { %v643_v38 = vpop.f32.mrf.mxu0  ;;  %v3394_v57 = vpop.f32.mrf.mxu1 }
  0xdf   : > { %v644_v41 = vadd.f32 %v3337_v9, %v643_v38  ;;  %2901 = vmatprep.mubr.msk.f32.mxu1 %vm1011_vm1, %v936_v35  ;;  %v939_v46 = vmax.f32 %v649_v37, 0.0 }
  0xe0   : > { %v2797_v42 = vpop.f32.mrf.mxu0  ;;  %2902 = vmatmul.mubr.msk.f32.gmra.mxu1 %vm1011_vm1, %v937_v36  ;;  %v3399_v60 = vpop.f32.mrf.mxu1 }
  0xe1   : > { %v938_v45 = vmax.f32 %v644_v41, 0.0  ;;  %v659_v47 = vadd.f32 %v2797_v42, %v3337_v9 }
  0xe2   : > { %v653_v48 = vpop.f32.mrf.mxu0  ;;  %v3402_v1 = vpop.f32.mrf.mxu1 }
  0xe3   : > { %v654_v50 = vadd.f32 %v3337_v9, %v653_v48  ;;  %2904 = vmatprep.mubr.msk.f32.mxu1 %vm1011_vm1, %v938_v45  ;;  %v941_v54 = vmax.f32 %v659_v47, 0.0 }
  0xe4   : > { %v2800_v51 = vpop.f32.mrf.mxu0  ;;  %2905 = vmatmul.mubr.msk.f32.gmra.mxu1 %vm1011_vm1, %v939_v46  ;;  %v3408_v8 = vpop.f32.mrf.mxu1 }
  0xe5   : > { %v940_v53 = vmax.f32 %v654_v50, 0.0  ;;  %v669_v55 = vadd.f32 %v2800_v51, %v3337_v9 }
  0xe6   : > { %v663_v56 = vpop.f32.mrf.mxu0  ;;  %v3414_v16 = vpop.f32.mrf.mxu1 }
  0xe7   : > { %v664_v58 = vadd.f32 %v3337_v9, %v663_v56  ;;  %2907 = vmatprep.mubr.msk.f32.mxu1 %vm1011_vm1, %v940_v53  ;;  %v943_v62 = vmax.f32 %v669_v55, 0.0 }
  0xe8   : > { %v2803_v59 = vpop.f32.mrf.mxu0  ;;  %2908 = vmatmul.mubr.msk.f32.gmra.mxu1 %vm1011_vm1, %v941_v54  ;;  %v3420_v23 = vpop.f32.mrf.mxu1 }
  0xe9   : > { %v942_v61 = vmax.f32 %v664_v58, 0.0  ;;  %v679_v63 = vadd.f32 %v2803_v59, %v3337_v9 }
  0xea   : > { %v673_v0 = vpop.f32.mrf.mxu0  ;;  %v3426_v31 = vpop.f32.mrf.mxu1 }
  0xeb   : > { %v674_v2 = vadd.f32 %v3337_v9, %v673_v0  ;;  %2910 = vmatprep.mubr.msk.f32.mxu1 %vm1011_vm1, %v942_v61  ;;  %v945_v5 = vmax.f32 %v679_v63, 0.0 }
  0xec   : > { %v2806_v3 = vpop.f32.mrf.mxu0  ;;  %2911 = vmatmul.mubr.msk.f32.gmra.mxu1 %vm1011_vm1, %v943_v62  ;;  %v3432_v40 = vpop.f32.mrf.mxu1 }
  0xed   : > { %v944_v4 = vmax.f32 %v674_v2, 0.0  ;;  %v689_v6 = vadd.f32 %v2806_v3, %v3337_v9 }
  0xee   : > { %v683_v7 = vpop.f32.mrf.mxu0  ;;  %v3438_v48 = vpop.f32.mrf.mxu1 }
  0xef   : > { %v684_v10 = vadd.f32 %v3337_v9, %v683_v7  ;;  %2913 = vmatprep.mubr.msk.f32.mxu1 %vm1011_vm1, %v944_v4  ;;  %v947_v13 = vmax.f32 %v689_v6, 0.0  ;;  %v774_v7 = vadd.f32 %v3337_v9, %v3366_v33  ;;  %v779_v33 = vadd.f32 %v3358_v29, %v3337_v9 }
  0xf0   : > { %v2809_v11 = vpop.f32.mrf.mxu0  ;;  %2914 = vmatmul.mubr.msk.f32.gmra.mxu1 %vm1011_vm1, %v945_v5  ;;  %v3444_v58 = vpop.f32.mrf.mxu1 }
  0xf1   : > { %v946_v12 = vmax.f32 %v684_v10, 0.0  ;;  %v699_v14 = vadd.f32 %v2809_v11, %v3337_v9 }
  0xf2   : > { %v693_v15 = vpop.f32.mrf.mxu0  ;;  %v3450_v3 = vpop.f32.mrf.mxu1 }
  0xf3   : > { %v694_v17 = vadd.f32 %v3337_v9, %v693_v15  ;;  %2916 = vmatprep.mubr.msk.f32.mxu1 %vm1011_vm1, %v946_v12  ;;  %v949_v20 = vmax.f32 %v699_v14, 0.0 }
  0xf4   : > { %v2812_v18 = vpop.f32.mrf.mxu0  ;;  %2917 = vmatmul.mubr.msk.f32.gmra.mxu1 %vm1011_vm1, %v947_v13  ;;  %v853_v13 = vpop.f32.mrf.mxu1 }
  0xf5   : > { %v948_v19 = vmax.f32 %v694_v17, 0.0  ;;  %v709_v21 = vadd.f32 %v2812_v18, %v3337_v9  ;;  %v964_v17 = vmax.f32 %v774_v7, 0.0  ;;  %v784_v18 = vadd.f32 %v3337_v9, %v3380_v43 }
  0xf6   : > { %v703_v22 = vpop.f32.mrf.mxu0  ;;  %v789_v43 = vadd.f32 %v3372_v39, %v3337_v9  ;;  %v814_v39 = vadd.f32 %v3337_v9, %v3408_v8 }
  0xf7   : > { %v704_v24 = vadd.f32 %v3337_v9, %v703_v22  ;;  %2919 = vmatprep.mubr.msk.f32.mxu1 %vm1011_vm1, %v948_v19  ;;  %v951_v27 = vmax.f32 %v709_v21, 0.0  ;;  %v966_v21 = vmax.f32 %v784_v18, 0.0  ;;  %v794_v22 = vadd.f32 %v3337_v9, %v3391_v52 }
  0xf8   : > { %v2815_v25 = vpop.f32.mrf.mxu0  ;;  %2920 = vmatmul.mubr.msk.f32.gmra.mxu1 %vm1011_vm1, %v949_v20  ;;  %v3465_v20 = vpop.f32.mrf.mxu1 }
  0xf9   : > { %v950_v26 = vmax.f32 %v704_v24, 0.0  ;;  %v719_v28 = vadd.f32 %v2815_v25, %v3337_v9  ;;  %v965_v24 = vmax.f32 %v779_v33, 0.0  ;;  %v968_v29 = vmax.f32 %v794_v22, 0.0 }
  0xfa   : > { %v713_v30 = vpop.f32.mrf.mxu0  ;;  %v863_v25 = vpop.f32.mrf.mxu1 }
  0xfb   : > { %v714_v32 = vadd.f32 %v3337_v9, %v713_v30  ;;  %2922 = vmatprep.mubr.msk.f32.mxu1 %vm1011_vm1, %v950_v26  ;;  %v953_v36 = vmax.f32 %v719_v28, 0.0  ;;  %v804_v26 = vadd.f32 %v3337_v9, %v3399_v60  ;;  %v799_v28 = vadd.f32 %v3386_v49, %v3337_v9 }
  0xfc   : > { %v2818_v34 = vpop.f32.mrf.mxu0  ;;  %2923 = vmatmul.mubr.msk.f32.gmra.mxu1 %vm1011_vm1, %v951_v27  ;;  %v967_v27 = vmax.f32 %v789_v43, 0.0  ;;  %v2863_v30 = vpop.f32.mrf.mxu1  ;;  %v972_v60 = vmax.f32 %v814_v39, 0.0  ;;  %v824_v49 = vadd.f32 %v3337_v9, %v3420_v23 }
  0xfd   : > { %v952_v35 = vmax.f32 %v714_v32, 0.0  ;;  %v729_v37 = vadd.f32 %v2818_v34, %v3337_v9  ;;  %v970_v52 = vmax.f32 %v804_v26, 0.0  ;;  %v969_v32 = vmax.f32 %v799_v28, 0.0 }
  0xfe   : > { %v723_v38 = vpop.f32.mrf.mxu0  ;;  %v809_v34 = vadd.f32 %v3394_v57, %v3337_v9  ;;  %v974_v8 = vmax.f32 %v824_v49, 0.0  ;;  %v834_v57 = vadd.f32 %v3337_v9, %v3432_v40 }
  0xff   : > { %v724_v41 = vadd.f32 %v3337_v9, %v723_v38  ;;  %2925 = vmatprep.mubr.msk.f32.mxu1 %vm1011_vm1, %v952_v35  ;;  %v955_v45 = vmax.f32 %v729_v37, 0.0  ;;  %v873_v35 = vpop.f32.mrf.mxu1  ;;  %v819_v37 = vadd.f32 %v3402_v1, %v3337_v9  ;;  %v844_v1 = vadd.f32 %v3337_v9, %v3444_v58 }
 0x100   : > { %v2821_v42 = vpop.f32.mrf.mxu0  ;;  %2926 = vmatmul.mubr.msk.f32.gmra.mxu1 %vm1011_vm1, %v953_v36  ;;  %v971_v36 = vmax.f32 %v809_v34, 0.0  ;;  %v976_v23 = vmax.f32 %v834_v57, 0.0 }
 0x101   : > { %v954_v44 = vmax.f32 %v724_v41, 0.0  ;;  %v739_v46 = vadd.f32 %v2821_v42, %v3337_v9  ;;  %v2866_v38 = vpop.f32.mrf.mxu1  ;;  %v973_v41 = vmax.f32 %v819_v37, 0.0  ;;  %v829_v42 = vadd.f32 %v3414_v16, %v3337_v9 }
 0x102   : > { %v733_v47 = vpop.f32.mrf.mxu0  ;;  %v978_v40 = vmax.f32 %v844_v1, 0.0  ;;  %v854_v16 = vadd.f32 %v3337_v9, %v853_v13 }
 0x103   : > { %v734_v50 = vadd.f32 %v3337_v9, %v733_v47  ;;  %2928 = vmatprep.mubr.msk.f32.mxu1 %vm1011_vm1, %v954_v44  ;;  %v957_v54 = vmax.f32 %v739_v46, 0.0  ;;  %v883_v44 = vpop.f32.mrf.mxu1  ;;  %v839_v46 = vadd.f32 %v3426_v31, %v3337_v9  ;;  %v864_v31 = vadd.f32 %v3337_v9, %v863_v25 }
 0x104   : > { %v2824_v51 = vpop.f32.mrf.mxu0  ;;  %2929 = vmatmul.mubr.msk.f32.gmra.mxu1 %vm1011_vm1, %v955_v45  ;;  %v975_v45 = vmax.f32 %v829_v42, 0.0 }
 0x105   : > { %v956_v53 = vmax.f32 %v734_v50, 0.0  ;;  %v749_v55 = vadd.f32 %v2824_v51, %v3337_v9  ;;  %v2869_v47 = vpop.f32.mrf.mxu1  ;;  %v977_v50 = vmax.f32 %v839_v46, 0.0  ;;  %v849_v51 = vadd.f32 %v3438_v48, %v3337_v9 }
 0x106   : > { %v743_v56 = vpop.f32.mrf.mxu0  ;;  %v874_v48 = vadd.f32 %v3337_v9, %v873_v35 }
 0x107   : > { %v744_v59 = vadd.f32 %v3337_v9, %v743_v56  ;;  %2931 = vmatprep.mubr.msk.f32.mxu1 %vm1011_vm1, %v956_v53  ;;  %v959_v63 = vmax.f32 %v749_v55, 0.0  ;;  %v893_v53 = vpop.f32.mrf.mxu1  ;;  %v979_v55 = vmax.f32 %v849_v51, 0.0  ;;  %v859_v56 = vadd.f32 %v3450_v3, %v3337_v9 }
 0x108   : > { %v2827_v61 = vpop.f32.mrf.mxu0  ;;  %2932 = vmatmul.mubr.msk.f32.gmra.mxu1 %vm1011_vm1, %v957_v54  ;;  %v980_v54 = vmax.f32 %v854_v16, 0.0  ;;  %v894_v7 = vadd.f32 %v3337_v9, %v893_v53 }
 0x109   : > { %v958_v62 = vmax.f32 %v744_v59, 0.0  ;;  %v759_v0 = vadd.f32 %v2827_v61, %v3337_v9  ;;  %v2872_v58 = vpop.f32.mrf.mxu1  ;;  %v982_v59 = vmax.f32 %v864_v31, 0.0  ;;  %v981_v61 = vmax.f32 %v859_v56, 0.0 }
 0x10a   : > { %v753_v2 = vpop.f32.mrf.mxu0  ;;  %v988_v13 = vmax.f32 %v894_v7, 0.0 }
 0x10b   : > { %v754_v4 = vadd.f32 %v3337_v9, %v753_v2  ;;  %2934 = vmatprep.mubr.msk.f32.mxu1 %vm1011_vm1, %v958_v62  ;;  %v961_v10 = vmax.f32 %v759_v0, 0.0  ;;  %v869_v62 = vadd.f32 %v3465_v20, %v3337_v9  ;;  %v984_v0 = vmax.f32 %v874_v48, 0.0 }
 0x10c   : > { %v2830_v5 = vpop.f32.mrf.mxu0  ;;  %2935 = vmatmul.mubr.msk.f32.gmra.mxu1 %vm1011_vm1, %v959_v63  ;;  %v903_v63 = vpop.f32.mrf.mxu1  ;;  %v884_v2 = vadd.f32 %v3337_v9, %v883_v44 }
 0x10d   : > { %v960_v6 = vmax.f32 %v754_v4, 0.0  ;;  %v769_v11 = vadd.f32 %v2830_v5, %v3337_v9  ;;  %v983_v3 = vmax.f32 %v869_v62, 0.0  ;;  %v879_v4 = vadd.f32 %v2863_v30, %v3337_v9 }
 0x10e   : > { %v763_v12 = vpop.f32.mrf.mxu0  ;;  %v2875_v5 = vpop.f32.mrf.mxu1 }
 0x10f   : > { %v764_v14 = vadd.f32 %v3337_v9, %v763_v12  ;;  %2937 = vmatprep.mubr.msk.f32.mxu1 %vm1011_vm1, %v960_v6  ;;  %v963_v19 = vmax.f32 %v769_v11, 0.0  ;;  %v986_v6 = vmax.f32 %v884_v2, 0.0  ;;  %v889_v11 = vadd.f32 %v2866_v38, %v3337_v9 }
 0x110   : > { %2938 = vmatmul.mubr.msk.f32.gmra.mxu1 %vm1011_vm1, %v961_v10  ;;  %v985_v10 = vmax.f32 %v879_v4, 0.0  ;;  %v913_v12 = vpop.f32.mrf.mxu1 }
 0x111   : > { %v962_v15 = vmax.f32 %v764_v14, 0.0  ;;  %v904_v14 = vadd.f32 %v3337_v9, %v903_v63  ;;  %v914_v33 = vadd.f32 %v3337_v9, %v913_v12 }
 0x112   : > { %v2878_v18 = vpop.f32.mrf.mxu1 }
 0x113   : > { %2940 = vmatprep.mubr.msk.f32.mxu1 %vm1011_vm1, %v962_v15  ;;  %v987_v15 = vmax.f32 %v889_v11, 0.0  ;;  %v929_v28 = vadd.f32 %v2878_v18, %v3337_v9 }
 0x114   : > { %2941 = vmatmul.mubr.msk.f32.gmra.mxu1 %vm1011_vm1, %v963_v19  ;;  %v990_v19 = vmax.f32 %v904_v14, 0.0  ;;  %v923_v22 = vpop.f32.mrf.mxu1 }
 0x115   : > { %2943 = vmatprep.mubr.msk.f32.mxu1 %vm1011_vm1, %v964_v17  ;;  %v899_v17 = vadd.f32 %v2869_v47, %v3337_v9  ;;  %v924_v43 = vadd.f32 %v3337_v9, %v923_v22  ;;  %v995_v30 = vmax.f32 %v929_v28, 0.0 }
 0x117   : > { %v989_v20 = vmax.f32 %v899_v17, 0.0  ;;  %v994_v26 = vmax.f32 %v924_v43, 0.0 }
 0x118   : > { %2944 = vmatmul.mubr.msk.f32.gmra.mxu1 %vm1011_vm1, %v965_v24  ;;  %v992_v24 = vmax.f32 %v914_v33, 0.0 }
 0x119   : > { %2946 = vmatprep.mubr.msk.f32.mxu1 %vm1011_vm1, %v966_v21  ;;  %v909_v21 = vadd.f32 %v2872_v58, %v3337_v9 }
 0x11b   : > { %v991_v25 = vmax.f32 %v909_v21, 0.0 }
 0x11c   : > { %2947 = vmatmul.mubr.msk.f32.gmra.mxu1 %vm1011_vm1, %v967_v27 }
 0x11d   : > { %2949 = vmatprep.mubr.msk.f32.mxu1 %vm1011_vm1, %v968_v29  ;;  %v919_v29 = vadd.f32 %v2875_v5, %v3337_v9 }
 0x11f   : > { %v993_v27 = vmax.f32 %v919_v29, 0.0 }
 0x120   : > { %2950 = vmatmul.mubr.msk.f32.gmra.mxu1 %vm1011_vm1, %v969_v32 }
 0x121   : > { %2952 = vmatprep.mubr.msk.f32.mxu1 %vm1011_vm1, %v970_v52  ;;  %v3548_v52 = vld [vmem:[%s3889_s4] ss:$0 sm:$0xff] }
 0x124   : > { %2953 = vmatmul.mubr.msk.f32.gmra.mxu1 %vm1011_vm1, %v971_v36 }
 0x125   : > { %2955 = vmatprep.mubr.msk.f32.mxu1 %vm1011_vm1, %v972_v60 }
 0x128   : > { %2956 = vmatmul.mubr.msk.f32.gmra.mxu1 %vm1011_vm1, %v973_v41 }
 0x129   : > { %2958 = vmatprep.mubr.msk.f32.mxu1 %vm1011_vm1, %v974_v8 }
 0x12c   : > { %2959 = vmatmul.mubr.msk.f32.gmra.mxu1 %vm1011_vm1, %v975_v45 }
 0x12d   : > { %2961 = vmatprep.mubr.msk.f32.mxu1 %vm1011_vm1, %v976_v23 }
 0x130   : > { %2962 = vmatmul.mubr.msk.f32.gmra.mxu1 %vm1011_vm1, %v977_v50 }
 0x131   : > { %2964 = vmatprep.mubr.msk.f32.mxu1 %vm1011_vm1, %v978_v40 }
 0x134   : > { %2965 = vmatmul.mubr.msk.f32.gmra.mxu1 %vm1011_vm1, %v979_v55 }
 0x135   : > { %2967 = vmatprep.mubr.msk.f32.mxu1 %vm1011_vm1, %v980_v54 }
 0x138   : > { %2968 = vmatmul.mubr.msk.f32.gmra.mxu1 %vm1011_vm1, %v981_v61 }
 0x139   : > { %2970 = vmatprep.mubr.msk.f32.mxu1 %vm1011_vm1, %v982_v59 }
 0x13c   : > { %2971 = vmatmul.mubr.msk.f32.gmra.mxu1 %vm1011_vm1, %v983_v3 }
 0x13d   : > { %2973 = vmatprep.mubr.msk.f32.mxu1 %vm1011_vm1, %v984_v0 }
 0x140   : > { %2974 = vmatmul.mubr.msk.f32.gmra.mxu1 %vm1011_vm1, %v985_v10 }
 0x141   : > { %2976 = vmatprep.mubr.msk.f32.mxu1 %vm1011_vm1, %v986_v6 }
 0x144   : > { %2977 = vmatmul.mubr.msk.f32.gmra.mxu1 %vm1011_vm1, %v987_v15 }
 0x145   : > { %2979 = vmatprep.mubr.msk.f32.mxu1 %vm1011_vm1, %v988_v13 }
 0x148   : > { %2980 = vmatmul.mubr.msk.f32.gmra.mxu1 %vm1011_vm1, %v989_v20 }
 0x149   : > { %2982 = vmatprep.mubr.msk.f32.mxu1 %vm1011_vm1, %v990_v19 }
 0x14c   : > { %2983 = vmatmul.mubr.msk.f32.gmra.mxu1 %vm1011_vm1, %v991_v25 }
 0x14d   : > { %2985 = vmatprep.mubr.msk.f32.mxu1 %vm1011_vm1, %v992_v24 }
 0x150   : > { %2986 = vmatmul.mubr.msk.f32.gmra.mxu1 %vm1011_vm1, %v993_v27 }
 0x151   : > { %2988 = vmatprep.mubr.msk.f32.mxu1 %vm1011_vm1, %v994_v26 }
 0x154   : > { %2989 = vmatmul.mubr.msk.f32.gmra.mxu1 %vm1011_vm1, %v995_v30 }
 0x198   : > { %v2897_v39 = vpop.f32.mrf.mxu1 }
 0x199   : > { %v1276_v32 = vadd.f32 %v2897_v39, %v3548_v52 }
 0x19a   : > { %v1270_v34 = vpop.f32.mrf.mxu1 }
 0x19b   : > { %v1271_v35 = vadd.f32 %v3548_v52, %v1270_v34  ;;  %v1590_v49 = vmax.f32 %v1276_v32, 0.0 }
 0x19c   : > { %v2900_v60 = vpop.f32.mrf.mxu1 }
 0x19d   : > { %v1589_v9 = vmax.f32 %v1271_v35, 0.0  ;;  %v1286_v36 = vadd.f32 %v2900_v60, %v3548_v52 }
 0x19e   : > { %v1280_v37 = vpop.f32.mrf.mxu1 }
 0x19f   : > { %v1281_v38 = vadd.f32 %v3548_v52, %v1280_v37  ;;  %3007 = vmatprep.mubr.msk.f32.mxu0 %vm1011_vm1, %v1589_v9  ;;  %v1592_v41 = vmax.f32 %v1286_v36, 0.0 }
 0x1a0   : > { %v2903_v8 = vpop.f32.mrf.mxu1  ;;  %3008 = vmatmul.mubr.msk.f32.vlgmr.msra.gmra.mxu0 %vm1011_vm1, %v1590_v49 }
 0x1a1   : > { %v1591_v57 = vmax.f32 %v1281_v38, 0.0  ;;  %v1296_v42 = vadd.f32 %v2903_v8, %v3548_v52 }
 0x1a2   : > { %v1290_v44 = vpop.f32.mrf.mxu1 }
 0x1a3   : > { %v1291_v23 = vadd.f32 %v3548_v52, %v1290_v44  ;;  %3010 = vmatprep.mubr.msk.f32.mxu0 %vm1011_vm1, %v1591_v57  ;;  %v1594_v46 = vmax.f32 %v1296_v42, 0.0 }
 0x1a4   : > { %v2906_v1 = vpop.f32.mrf.mxu1  ;;  %3011 = vmatmul.mubr.msk.f32.gmra.mxu0 %vm1011_vm1, %v1592_v41 }
 0x1a5   : > { %v1593_v45 = vmax.f32 %v1291_v23, 0.0  ;;  %v1306_v47 = vadd.f32 %v2906_v1, %v3548_v52 }
 0x1a6   : > { %v1300_v40 = vpop.f32.mrf.mxu1 }
 0x1a7   : > { %v1301_v16 = vadd.f32 %v3548_v52, %v1300_v40  ;;  %3013 = vmatprep.mubr.msk.f32.mxu0 %vm1011_vm1, %v1593_v45  ;;  %v1596_v53 = vmax.f32 %v1306_v47, 0.0 }
 0x1a8   : > { %v2909_v50 = vpop.f32.mrf.mxu1  ;;  %3014 = vmatmul.mubr.msk.f32.gmra.mxu0 %vm1011_vm1, %v1594_v46 }
 0x1a9   : > { %v1595_v51 = vmax.f32 %v1301_v16, 0.0  ;;  %v1316_v54 = vadd.f32 %v2909_v50, %v3548_v52 }
 0x1aa   : > { %v1310_v31 = vpop.f32.mrf.mxu1 }
 0x1ab   : > { %v1311_v55 = vadd.f32 %v3548_v52, %v1310_v31  ;;  %3016 = vmatprep.mubr.msk.f32.mxu0 %vm1011_vm1, %v1595_v51  ;;  %v1598_v59 = vmax.f32 %v1316_v54, 0.0 }
 0x1ac   : > { %v2912_v56 = vpop.f32.mrf.mxu1  ;;  %3017 = vmatmul.mubr.msk.f32.gmra.mxu0 %vm1011_vm1, %v1596_v53 }
 0x1ad   : > { %v1597_v58 = vmax.f32 %v1311_v55, 0.0  ;;  %v1326_v48 = vadd.f32 %v2912_v56, %v3548_v52 }
 0x1ae   : > { %v1320_v61 = vpop.f32.mrf.mxu1 }
 0x1af   : > { %v1321_v62 = vadd.f32 %v3548_v52, %v1320_v61  ;;  %3019 = vmatprep.mubr.msk.f32.mxu0 %vm1011_vm1, %v1597_v58  ;;  %v1600_v2 = vmax.f32 %v1326_v48, 0.0 }
 0x1b0   : > { %v2915_v63 = vpop.f32.mrf.mxu1  ;;  %3020 = vmatmul.mubr.msk.f32.gmra.mxu0 %vm1011_vm1, %v1598_v59 }
 0x1b1   : > { %v1599_v0 = vmax.f32 %v1321_v62, 0.0  ;;  %v1336_v3 = vadd.f32 %v2915_v63, %v3548_v52 }
 0x1b2   : > { %v1330_v4 = vpop.f32.mrf.mxu1 }
 0x1b3   : > { %v1331_v5 = vadd.f32 %v3548_v52, %v1330_v4  ;;  %3022 = vmatprep.mubr.msk.f32.mxu0 %vm1011_vm1, %v1599_v0  ;;  %v1602_v10 = vmax.f32 %v1336_v3, 0.0 }
 0x1b4   : > { %v2918_v6 = vpop.f32.mrf.mxu1  ;;  %3023 = vmatmul.mubr.msk.f32.gmra.mxu0 %vm1011_vm1, %v1600_v2 }
 0x1b5   : > { %v1601_v7 = vmax.f32 %v1331_v5, 0.0  ;;  %v1346_v11 = vadd.f32 %v2918_v6, %v3548_v52 }
 0x1b6   : > { %v1340_v12 = vpop.f32.mrf.mxu1 }
 0x1b7   : > { %v1341_v13 = vadd.f32 %v3548_v52, %v1340_v12  ;;  %3025 = vmatprep.mubr.msk.f32.mxu0 %vm1011_vm1, %v1601_v7  ;;  %v1604_v17 = vmax.f32 %v1346_v11, 0.0 }
 0x1b8   : > { %v2921_v14 = vpop.f32.mrf.mxu1  ;;  %3026 = vmatmul.mubr.msk.f32.gmra.mxu0 %vm1011_vm1, %v1602_v10 }
 0x1b9   : > { %v1603_v15 = vmax.f32 %v1341_v13, 0.0  ;;  %v1356_v18 = vadd.f32 %v2921_v14, %v3548_v52 }
 0x1ba   : > { %v1350_v19 = vpop.f32.mrf.mxu1 }
 0x1bb   : > { %v1351_v33 = vadd.f32 %v3548_v52, %v1350_v19  ;;  %3028 = vmatprep.mubr.msk.f32.mxu0 %vm1011_vm1, %v1603_v15  ;;  %v1606_v22 = vmax.f32 %v1356_v18, 0.0 }
 0x1bc   : > { %v2924_v20 = vpop.f32.mrf.mxu1  ;;  %3029 = vmatmul.mubr.msk.f32.gmra.mxu0 %vm1011_vm1, %v1604_v17 }
 0x1bd   : > { %v1605_v21 = vmax.f32 %v1351_v33, 0.0  ;;  %v1366_v24 = vadd.f32 %v2924_v20, %v3548_v52 }
 0x1be   : > { %v1360_v43 = vpop.f32.mrf.mxu1 }
 0x1bf   : > { %v1361_v25 = vadd.f32 %v3548_v52, %v1360_v43  ;;  %3031 = vmatprep.mubr.msk.f32.mxu0 %vm1011_vm1, %v1605_v21  ;;  %v1608_v27 = vmax.f32 %v1366_v24, 0.0 }
 0x1c0   : > { %v2927_v29 = vpop.f32.mrf.mxu1  ;;  %3032 = vmatmul.mubr.msk.f32.gmra.mxu0 %vm1011_vm1, %v1606_v22 }
 0x1c1   : > { %v1607_v26 = vmax.f32 %v1361_v25, 0.0  ;;  %v1376_v28 = vadd.f32 %v2927_v29, %v3548_v52 }
 0x1c2   : > { %v1370_v30 = vpop.f32.mrf.mxu1 }
 0x1c3   : > { %v1371_v39 = vadd.f32 %v3548_v52, %v1370_v30  ;;  %3034 = vmatprep.mubr.msk.f32.mxu0 %vm1011_vm1, %v1607_v26  ;;  %v1610_v35 = vmax.f32 %v1376_v28, 0.0 }
 0x1c4   : > { %v2930_v32 = vpop.f32.mrf.mxu1  ;;  %3035 = vmatmul.mubr.msk.f32.gmra.mxu0 %vm1011_vm1, %v1608_v27 }
 0x1c5   : > { %v1609_v34 = vmax.f32 %v1371_v39, 0.0  ;;  %v1386_v60 = vadd.f32 %v2930_v32, %v3548_v52 }
 0x1c6   : > { %v1380_v9 = vpop.f32.mrf.mxu1 }
 0x1c7   : > { %v1381_v49 = vadd.f32 %v3548_v52, %v1380_v9  ;;  %3037 = vmatprep.mubr.msk.f32.mxu0 %vm1011_vm1, %v1609_v34  ;;  %v1612_v38 = vmax.f32 %v1386_v60, 0.0 }
 0x1c8   : > { %v2933_v36 = vpop.f32.mrf.mxu1  ;;  %3038 = vmatmul.mubr.msk.f32.gmra.mxu0 %vm1011_vm1, %v1610_v35 }
 0x1c9   : > { %v1611_v37 = vmax.f32 %v1381_v49, 0.0  ;;  %v1396_v8 = vadd.f32 %v2933_v36, %v3548_v52 }
 0x1ca   : > { %v1390_v57 = vpop.f32.mrf.mxu1 }
 0x1cb   : > { %v1391_v41 = vadd.f32 %v3548_v52, %v1390_v57  ;;  %3040 = vmatprep.mubr.msk.f32.mxu0 %vm1011_vm1, %v1611_v37  ;;  %v1614_v23 = vmax.f32 %v1396_v8, 0.0 }
 0x1cc   : > { %v2936_v42 = vpop.f32.mrf.mxu1  ;;  %3041 = vmatmul.mubr.msk.f32.gmra.mxu0 %vm1011_vm1, %v1612_v38 }
 0x1cd   : > { %v1613_v44 = vmax.f32 %v1391_v41, 0.0  ;;  %v1406_v1 = vadd.f32 %v2936_v42, %v3548_v52 }
 0x1ce   : > { %v1400_v45 = vpop.f32.mrf.mxu1 }
 0x1cf   : > { %v1401_v46 = vadd.f32 %v3548_v52, %v1400_v45  ;;  %3043 = vmatprep.mubr.msk.f32.mxu0 %vm1011_vm1, %v1613_v44  ;;  %v1616_v16 = vmax.f32 %v1406_v1, 0.0 }
 0x1d0   : > { %v2939_v47 = vpop.f32.mrf.mxu1  ;;  %3044 = vmatmul.mubr.msk.f32.gmra.mxu0 %vm1011_vm1, %v1614_v23 }
 0x1d1   : > { %v1615_v40 = vmax.f32 %v1401_v46, 0.0  ;;  %v1416_v50 = vadd.f32 %v2939_v47, %v3548_v52 }
 0x1d2   : > { %v1410_v51 = vpop.f32.mrf.mxu1 }
 0x1d3   : > { %v1411_v53 = vadd.f32 %v3548_v52, %v1410_v51  ;;  %3046 = vmatprep.mubr.msk.f32.mxu0 %vm1011_vm1, %v1615_v40  ;;  %v1618_v55 = vmax.f32 %v1416_v50, 0.0 }
 0x1d4   : > { %v2942_v54 = vpop.f32.mrf.mxu1  ;;  %3047 = vmatmul.mubr.msk.f32.gmra.mxu0 %vm1011_vm1, %v1616_v16 }
 0x1d5   : > { %v1617_v31 = vmax.f32 %v1411_v53, 0.0  ;;  %v1426_v56 = vadd.f32 %v2942_v54, %v3548_v52 }
 0x1d6   : > { %v1420_v58 = vpop.f32.mrf.mxu1 }
 0x1d7   : > { %v1421_v59 = vadd.f32 %v3548_v52, %v1420_v58  ;;  %3049 = vmatprep.mubr.msk.f32.mxu0 %vm1011_vm1, %v1617_v31  ;;  %v1620_v62 = vmax.f32 %v1426_v56, 0.0 }
 0x1d8   : > { %v2945_v48 = vpop.f32.mrf.mxu1  ;;  %3050 = vmatmul.mubr.msk.f32.gmra.mxu0 %vm1011_vm1, %v1618_v55 }
 0x1d9   : > { %v1619_v61 = vmax.f32 %v1421_v59, 0.0  ;;  %v1436_v63 = vadd.f32 %v2945_v48, %v3548_v52 }
 0x1da   : > { %v1430_v0 = vpop.f32.mrf.mxu1 }
 0x1db   : > { %v1431_v2 = vadd.f32 %v3548_v52, %v1430_v0  ;;  %3052 = vmatprep.mubr.msk.f32.mxu0 %vm1011_vm1, %v1619_v61  ;;  %v1622_v5 = vmax.f32 %v1436_v63, 0.0 }
 0x1dc   : > { %v2948_v3 = vpop.f32.mrf.mxu1  ;;  %3053 = vmatmul.mubr.msk.f32.gmra.mxu0 %vm1011_vm1, %v1620_v62 }
 0x1dd   : > { %v1621_v4 = vmax.f32 %v1431_v2, 0.0  ;;  %v1446_v6 = vadd.f32 %v2948_v3, %v3548_v52 }
 0x1de   : > { %v1440_v7 = vpop.f32.mrf.mxu1 }
 0x1df   : > { %v1441_v10 = vadd.f32 %v3548_v52, %v1440_v7  ;;  %3055 = vmatprep.mubr.msk.f32.mxu0 %vm1011_vm1, %v1621_v4  ;;  %v1624_v13 = vmax.f32 %v1446_v6, 0.0 }
 0x1e0   : > { %v2951_v11 = vpop.f32.mrf.mxu1  ;;  %3056 = vmatmul.mubr.msk.f32.gmra.mxu0 %vm1011_vm1, %v1622_v5 }
 0x1e1   : > { %v1623_v12 = vmax.f32 %v1441_v10, 0.0  ;;  %v1456_v14 = vadd.f32 %v2951_v11, %v3548_v52 }
 0x1e2   : > { %v1450_v15 = vpop.f32.mrf.mxu1 }
 0x1e3   : > { %v1451_v17 = vadd.f32 %v3548_v52, %v1450_v15  ;;  %3058 = vmatprep.mubr.msk.f32.mxu0 %vm1011_vm1, %v1623_v12  ;;  %v1626_v33 = vmax.f32 %v1456_v14, 0.0 }
 0x1e4   : > { %v2954_v18 = vpop.f32.mrf.mxu1  ;;  %3059 = vmatmul.mubr.msk.f32.gmra.mxu0 %vm1011_vm1, %v1624_v13 }
 0x1e5   : > { %v1625_v19 = vmax.f32 %v1451_v17, 0.0  ;;  %v1466_v20 = vadd.f32 %v2954_v18, %v3548_v52 }
 0x1e6   : > { %v1460_v21 = vpop.f32.mrf.mxu1 }
 0x1e7   : > { %v1461_v22 = vadd.f32 %v3548_v52, %v1460_v21  ;;  %3061 = vmatprep.mubr.msk.f32.mxu0 %vm1011_vm1, %v1625_v19  ;;  %v1628_v25 = vmax.f32 %v1466_v20, 0.0 }
 0x1e8   : > { %v2957_v24 = vpop.f32.mrf.mxu1  ;;  %3062 = vmatmul.mubr.msk.f32.gmra.mxu0 %vm1011_vm1, %v1626_v33 }
 0x1e9   : > { %v1627_v43 = vmax.f32 %v1461_v22, 0.0  ;;  %v1476_v29 = vadd.f32 %v2957_v24, %v3548_v52 }
 0x1ea   : > { %v1470_v26 = vpop.f32.mrf.mxu1 }
 0x1eb   : > { %v1471_v27 = vadd.f32 %v3548_v52, %v1470_v26  ;;  %3064 = vmatprep.mubr.msk.f32.mxu0 %vm1011_vm1, %v1627_v43  ;;  %v1630_v39 = vmax.f32 %v1476_v29, 0.0 }
 0x1ec   : > { %v2960_v28 = vpop.f32.mrf.mxu1  ;;  %3065 = vmatmul.mubr.msk.f32.gmra.mxu0 %vm1011_vm1, %v1628_v25 }
 0x1ed   : > { %v1629_v30 = vmax.f32 %v1471_v27, 0.0  ;;  %v1486_v32 = vadd.f32 %v2960_v28, %v3548_v52 }
 0x1ee   : > { %v1480_v34 = vpop.f32.mrf.mxu1 }
 0x1ef   : > { %v1481_v35 = vadd.f32 %v3548_v52, %v1480_v34  ;;  %3067 = vmatprep.mubr.msk.f32.mxu0 %vm1011_vm1, %v1629_v30  ;;  %v1632_v49 = vmax.f32 %v1486_v32, 0.0 }
 0x1f0   : > { %v2963_v60 = vpop.f32.mrf.mxu1  ;;  %3068 = vmatmul.mubr.msk.f32.gmra.mxu0 %vm1011_vm1, %v1630_v39 }
 0x1f1   : > { %v1631_v9 = vmax.f32 %v1481_v35, 0.0  ;;  %v1496_v36 = vadd.f32 %v2963_v60, %v3548_v52  ;;  %v3681_v35 = vld [vmem:[%s3891_s6] ss:$0 sm:$0xff] }
 0x1f2   : > { %v1490_v37 = vpop.f32.mrf.mxu1 }
 0x1f3   : > { %v1491_v38 = vadd.f32 %v3548_v52, %v1490_v37  ;;  %3070 = vmatprep.mubr.msk.f32.mxu0 %vm1011_vm1, %v1631_v9  ;;  %v1634_v41 = vmax.f32 %v1496_v36, 0.0 }
 0x1f4   : > { %v2966_v8 = vpop.f32.mrf.mxu1  ;;  %3071 = vmatmul.mubr.msk.f32.gmra.mxu0 %vm1011_vm1, %v1632_v49 }
 0x1f5   : > { %v1633_v57 = vmax.f32 %v1491_v38, 0.0  ;;  %v1506_v42 = vadd.f32 %v2966_v8, %v3548_v52 }
 0x1f6   : > { %v1500_v44 = vpop.f32.mrf.mxu1 }
 0x1f7   : > { %v1501_v23 = vadd.f32 %v3548_v52, %v1500_v44  ;;  %3073 = vmatprep.mubr.msk.f32.mxu0 %vm1011_vm1, %v1633_v57  ;;  %v1636_v46 = vmax.f32 %v1506_v42, 0.0 }
 0x1f8   : > { %v2969_v1 = vpop.f32.mrf.mxu1  ;;  %3074 = vmatmul.mubr.msk.f32.gmra.mxu0 %vm1011_vm1, %v1634_v41 }
 0x1f9   : > { %v1635_v45 = vmax.f32 %v1501_v23, 0.0  ;;  %v1516_v47 = vadd.f32 %v2969_v1, %v3548_v52 }
 0x1fa   : > { %v1510_v40 = vpop.f32.mrf.mxu1 }
 0x1fb   : > { %v1511_v16 = vadd.f32 %v3548_v52, %v1510_v40  ;;  %3076 = vmatprep.mubr.msk.f32.mxu0 %vm1011_vm1, %v1635_v45  ;;  %v1638_v53 = vmax.f32 %v1516_v47, 0.0 }
 0x1fc   : > { %v2972_v50 = vpop.f32.mrf.mxu1  ;;  %3077 = vmatmul.mubr.msk.f32.gmra.mxu0 %vm1011_vm1, %v1636_v46 }
 0x1fd   : > { %v1637_v51 = vmax.f32 %v1511_v16, 0.0  ;;  %v1526_v54 = vadd.f32 %v2972_v50, %v3548_v52 }
 0x1fe   : > { %v1520_v31 = vpop.f32.mrf.mxu1 }
 0x1ff   : > { %v1521_v55 = vadd.f32 %v3548_v52, %v1520_v31  ;;  %3079 = vmatprep.mubr.msk.f32.mxu0 %vm1011_vm1, %v1637_v51  ;;  %v1640_v59 = vmax.f32 %v1526_v54, 0.0 }
 0x200   : > { %v2975_v56 = vpop.f32.mrf.mxu1  ;;  %3080 = vmatmul.mubr.msk.f32.gmra.mxu0 %vm1011_vm1, %v1638_v53 }
 0x201   : > { %v1639_v58 = vmax.f32 %v1521_v55, 0.0  ;;  %v1536_v48 = vadd.f32 %v2975_v56, %v3548_v52 }
 0x202   : > { %v1530_v61 = vpop.f32.mrf.mxu1 }
 0x203   : > { %v1531_v62 = vadd.f32 %v3548_v52, %v1530_v61  ;;  %3082 = vmatprep.mubr.msk.f32.mxu0 %vm1011_vm1, %v1639_v58  ;;  %v1642_v2 = vmax.f32 %v1536_v48, 0.0 }
 0x204   : > { %v2978_v63 = vpop.f32.mrf.mxu1  ;;  %3083 = vmatmul.mubr.msk.f32.gmra.mxu0 %vm1011_vm1, %v1640_v59 }
 0x205   : > { %v1641_v0 = vmax.f32 %v1531_v62, 0.0  ;;  %v1546_v3 = vadd.f32 %v2978_v63, %v3548_v52 }
 0x206   : > { %v1540_v4 = vpop.f32.mrf.mxu1 }
 0x207   : > { %v1541_v5 = vadd.f32 %v3548_v52, %v1540_v4  ;;  %3085 = vmatprep.mubr.msk.f32.mxu0 %vm1011_vm1, %v1641_v0  ;;  %v1644_v10 = vmax.f32 %v1546_v3, 0.0 }
 0x208   : > { %v2981_v6 = vpop.f32.mrf.mxu1  ;;  %3086 = vmatmul.mubr.msk.f32.gmra.mxu0 %vm1011_vm1, %v1642_v2 }
 0x209   : > { %v1643_v7 = vmax.f32 %v1541_v5, 0.0  ;;  %v1556_v11 = vadd.f32 %v2981_v6, %v3548_v52 }
 0x20a   : > { %v1550_v12 = vpop.f32.mrf.mxu1 }
 0x20b   : > { %v1551_v13 = vadd.f32 %v3548_v52, %v1550_v12  ;;  %3088 = vmatprep.mubr.msk.f32.mxu0 %vm1011_vm1, %v1643_v7  ;;  %v1646_v17 = vmax.f32 %v1556_v11, 0.0 }
 0x20c   : > { %v2984_v14 = vpop.f32.mrf.mxu1  ;;  %3089 = vmatmul.mubr.msk.f32.gmra.mxu0 %vm1011_vm1, %v1644_v10 }
 0x20d   : > { %v1645_v15 = vmax.f32 %v1551_v13, 0.0  ;;  %v1566_v18 = vadd.f32 %v2984_v14, %v3548_v52 }
 0x20e   : > { %v1560_v19 = vpop.f32.mrf.mxu1 }
 0x20f   : > { %v1561_v33 = vadd.f32 %v3548_v52, %v1560_v19  ;;  %3091 = vmatprep.mubr.msk.f32.mxu0 %vm1011_vm1, %v1645_v15  ;;  %v1648_v22 = vmax.f32 %v1566_v18, 0.0 }
 0x210   : > { %v2987_v20 = vpop.f32.mrf.mxu1  ;;  %3092 = vmatmul.mubr.msk.f32.gmra.mxu0 %vm1011_vm1, %v1646_v17 }
 0x211   : > { %v1647_v21 = vmax.f32 %v1561_v33, 0.0  ;;  %v1576_v24 = vadd.f32 %v2987_v20, %v3548_v52 }
 0x212   : > { %v1570_v43 = vpop.f32.mrf.mxu1 }
 0x213   : > { %v1571_v25 = vadd.f32 %v3548_v52, %v1570_v43  ;;  %3094 = vmatprep.mubr.msk.f32.mxu0 %vm1011_vm1, %v1647_v21  ;;  %v1650_v27 = vmax.f32 %v1576_v24, 0.0 }
 0x214   : > { %v2990_v29 = vpop.f32.mrf.mxu1  ;;  %3095 = vmatmul.mubr.msk.f32.gmra.mxu0 %vm1011_vm1, %v1648_v22 }
 0x215   : > { %v1649_v26 = vmax.f32 %v1571_v25, 0.0  ;;  %v1586_v28 = vadd.f32 %v2990_v29, %v3548_v52 }
 0x216   : > { %v1580_v30 = vpop.f32.mrf.mxu1 }
 0x217   : > { %v1581_v39 = vadd.f32 %v3548_v52, %v1580_v30  ;;  %3097 = vmatprep.mubr.msk.f32.mxu0 %vm1011_vm1, %v1649_v26  ;;  %v1652_v34 = vmax.f32 %v1586_v28, 0.0 }
 0x218   : > { %3098 = vmatmul.mubr.msk.f32.gmra.mxu0 %vm1011_vm1, %v1650_v27 }
 0x219   : > { %v1651_v32 = vmax.f32 %v1581_v39, 0.0 }
 0x21b   : > { %3100 = vmatprep.mubr.msk.f32.mxu0 %vm1011_vm1, %v1651_v32 }
 0x21c   : > { %3101 = vmatmul.mubr.msk.f32.gmra.mxu0 %vm1011_vm1, %v1652_v34 }
 0x260   : > { %v3009_v52 = vpop.f32.mrf.mxu0 }
 0x261   : > { %v1932_v60 = vadd.f32 %v3009_v52, %v3681_v35 }
 0x262   : > { %v1926_v9 = vpop.f32.mrf.mxu0 }
 0x263   : > { %2247 = vst.msk [vmem:[%s3688_s10 + $0x8] sm:$0xff] %vm2245_vm2, %v1932_v60  ;;  %v1927_v49 = vadd.f32 %v3681_v35, %v1926_v9 }
 0x264   : > { %v3012_v36 = vpop.f32.mrf.mxu0 }
 0x265   : > { %2246 = vst.msk [vmem:[%s3688_s10] sm:$0xff] %vm2245_vm2, %v1927_v49  ;;  %v1942_v37 = vadd.f32 %v3012_v36, %v3681_v35 }
 0x266   : > { %v1936_v38 = vpop.f32.mrf.mxu0 }
 0x267   : > { %2249 = vst.msk [vmem:[%s3688_s10 + $0x18] sm:$0xff] %vm2245_vm2, %v1942_v37  ;;  %v1937_v8 = vadd.f32 %v3681_v35, %v1936_v38 }
 0x268   : > { %v3015_v57 = vpop.f32.mrf.mxu0 }
 0x269   : > { %2248 = vst.msk [vmem:[%s3688_s10 + $0x10] sm:$0xff] %vm2245_vm2, %v1937_v8  ;;  %v1952_v41 = vadd.f32 %v3015_v57, %v3681_v35 }
 0x26a   : > { %v1946_v42 = vpop.f32.mrf.mxu0 }
 0x26b   : > { %2251 = vst.msk [vmem:[%s3688_s10 + $0x28] sm:$0xff] %vm2245_vm2, %v1952_v41  ;;  %v1947_v44 = vadd.f32 %v3681_v35, %v1946_v42 }
 0x26c   : > { %v3018_v23 = vpop.f32.mrf.mxu0 }
 0x26d   : > { %2250 = vst.msk [vmem:[%s3688_s10 + $0x20] sm:$0xff] %vm2245_vm2, %v1947_v44  ;;  %v1962_v1 = vadd.f32 %v3018_v23, %v3681_v35 }
 0x26e   : > { %v1956_v45 = vpop.f32.mrf.mxu0 }
 0x26f   : > { %2253 = vst.msk [vmem:[%s3688_s10 + $0x38] sm:$0xff] %vm2245_vm2, %v1962_v1  ;;  %v1957_v46 = vadd.f32 %v3681_v35, %v1956_v45 }
 0x270   : > { %v3021_v47 = vpop.f32.mrf.mxu0 }
 0x271   : > { %2252 = vst.msk [vmem:[%s3688_s10 + $0x30] sm:$0xff] %vm2245_vm2, %v1957_v46  ;;  %v1972_v40 = vadd.f32 %v3021_v47, %v3681_v35 }
 0x272   : > { %v1966_v16 = vpop.f32.mrf.mxu0 }
 0x273   : > { %2255 = vst.msk [vmem:[%s3688_s10 + $0x48] sm:$0xff] %vm2245_vm2, %v1972_v40  ;;  %v1967_v50 = vadd.f32 %v3681_v35, %v1966_v16 }
 0x274   : > { %v3024_v51 = vpop.f32.mrf.mxu0 }
 0x275   : > { %2254 = vst.msk [vmem:[%s3688_s10 + $0x40] sm:$0xff] %vm2245_vm2, %v1967_v50  ;;  %v1982_v53 = vadd.f32 %v3024_v51, %v3681_v35 }
 0x276   : > { %v1976_v54 = vpop.f32.mrf.mxu0 }
 0x277   : > { %2257 = vst.msk [vmem:[%s3688_s10 + $0x58] sm:$0xff] %vm2245_vm2, %v1982_v53  ;;  %v1977_v31 = vadd.f32 %v3681_v35, %v1976_v54 }
 0x278   : > { %v3027_v55 = vpop.f32.mrf.mxu0 }
 0x279   : > { %2256 = vst.msk [vmem:[%s3688_s10 + $0x50] sm:$0xff] %vm2245_vm2, %v1977_v31  ;;  %v1992_v56 = vadd.f32 %v3027_v55, %v3681_v35 }
 0x27a   : > { %v1986_v58 = vpop.f32.mrf.mxu0 }
 0x27b   : > { %2259 = vst.msk [vmem:[%s3688_s10 + $0x68] sm:$0xff] %vm2245_vm2, %v1992_v56  ;;  %v1987_v59 = vadd.f32 %v3681_v35, %v1986_v58 }
 0x27c   : > { %v3030_v48 = vpop.f32.mrf.mxu0 }
 0x27d   : > { %2258 = vst.msk [vmem:[%s3688_s10 + $0x60] sm:$0xff] %vm2245_vm2, %v1987_v59  ;;  %v2002_v61 = vadd.f32 %v3030_v48, %v3681_v35 }
 0x27e   : > { %v1996_v62 = vpop.f32.mrf.mxu0 }
 0x27f   : > { %2261 = vst.msk [vmem:[%s3688_s10 + $0x78] sm:$0xff] %vm2245_vm2, %v2002_v61  ;;  %v1997_v63 = vadd.f32 %v3681_v35, %v1996_v62 }
 0x280   : > { %v3033_v0 = vpop.f32.mrf.mxu0 }
 0x281   : > { %2260 = vst.msk [vmem:[%s3688_s10 + $0x70] sm:$0xff] %vm2245_vm2, %v1997_v63  ;;  %v2012_v2 = vadd.f32 %v3033_v0, %v3681_v35 }
 0x282   : > { %v2006_v3 = vpop.f32.mrf.mxu0 }
 0x283   : > { %2263 = vst.msk [vmem:[%s3688_s10 + $0x88] sm:$0xff] %vm2245_vm2, %v2012_v2  ;;  %v2007_v4 = vadd.f32 %v3681_v35, %v2006_v3 }
 0x284   : > { %v3036_v5 = vpop.f32.mrf.mxu0 }
 0x285   : > { %2262 = vst.msk [vmem:[%s3688_s10 + $0x80] sm:$0xff] %vm2245_vm2, %v2007_v4  ;;  %v2022_v6 = vadd.f32 %v3036_v5, %v3681_v35 }
 0x286   : > { %v2016_v7 = vpop.f32.mrf.mxu0 }
 0x287   : > { %2265 = vst.msk [vmem:[%s3688_s10 + $0x98] sm:$0xff] %vm2245_vm2, %v2022_v6  ;;  %v2017_v10 = vadd.f32 %v3681_v35, %v2016_v7 }
 0x288   : > { %v3039_v11 = vpop.f32.mrf.mxu0 }
 0x289   : > { %2264 = vst.msk [vmem:[%s3688_s10 + $0x90] sm:$0xff] %vm2245_vm2, %v2017_v10  ;;  %v2032_v12 = vadd.f32 %v3039_v11, %v3681_v35 }
 0x28a   : > { %v2026_v13 = vpop.f32.mrf.mxu0 }
 0x28b   : > { %2267 = vst.msk [vmem:[%s3688_s10 + $0xa8] sm:$0xff] %vm2245_vm2, %v2032_v12  ;;  %v2027_v14 = vadd.f32 %v3681_v35, %v2026_v13 }
 0x28c   : > { %v3042_v15 = vpop.f32.mrf.mxu0 }
 0x28d   : > { %2266 = vst.msk [vmem:[%s3688_s10 + $0xa0] sm:$0xff] %vm2245_vm2, %v2027_v14  ;;  %v2042_v17 = vadd.f32 %v3042_v15, %v3681_v35 }
 0x28e   : > { %v2036_v18 = vpop.f32.mrf.mxu0 }
 0x28f   : > { %2269 = vst.msk [vmem:[%s3688_s10 + $0xb8] sm:$0xff] %vm2245_vm2, %v2042_v17  ;;  %v2037_v19 = vadd.f32 %v3681_v35, %v2036_v18 }
 0x290   : > { %v3045_v33 = vpop.f32.mrf.mxu0 }
 0x291   : > { %2268 = vst.msk [vmem:[%s3688_s10 + $0xb0] sm:$0xff] %vm2245_vm2, %v2037_v19  ;;  %v2052_v20 = vadd.f32 %v3045_v33, %v3681_v35 }
 0x292   : > { %v2046_v21 = vpop.f32.mrf.mxu0 }
 0x293   : > { %2271 = vst.msk [vmem:[%s3688_s10 + $0xc8] sm:$0xff] %vm2245_vm2, %v2052_v20  ;;  %v2047_v22 = vadd.f32 %v3681_v35, %v2046_v21 }
 0x294   : > { %v3048_v24 = vpop.f32.mrf.mxu0 }
 0x295   : > { %2270 = vst.msk [vmem:[%s3688_s10 + $0xc0] sm:$0xff] %vm2245_vm2, %v2047_v22  ;;  %v2062_v43 = vadd.f32 %v3048_v24, %v3681_v35 }
 0x296   : > { %v2056_v25 = vpop.f32.mrf.mxu0 }
 0x297   : > { %2273 = vst.msk [vmem:[%s3688_s10 + $0xd8] sm:$0xff] %vm2245_vm2, %v2062_v43  ;;  %v2057_v29 = vadd.f32 %v3681_v35, %v2056_v25 }
 0x298   : > { %v3051_v26 = vpop.f32.mrf.mxu0 }
 0x299   : > { %2272 = vst.msk [vmem:[%s3688_s10 + $0xd0] sm:$0xff] %vm2245_vm2, %v2057_v29  ;;  %v2072_v27 = vadd.f32 %v3051_v26, %v3681_v35 }
 0x29a   : > { %v2066_v28 = vpop.f32.mrf.mxu0 }
 0x29b   : > { %2275 = vst.msk [vmem:[%s3688_s10 + $0xe8] sm:$0xff] %vm2245_vm2, %v2072_v27  ;;  %v2067_v30 = vadd.f32 %v3681_v35, %v2066_v28 }
 0x29c   : > { %v3054_v39 = vpop.f32.mrf.mxu0 }
 0x29d   : > { %2274 = vst.msk [vmem:[%s3688_s10 + $0xe0] sm:$0xff] %vm2245_vm2, %v2067_v30  ;;  %v2082_v32 = vadd.f32 %v3054_v39, %v3681_v35 }
 0x29e   : > { %v2076_v34 = vpop.f32.mrf.mxu0 }
 0x29f   : > { %2277 = vst.msk [vmem:[%s3688_s10 + $0xf8] sm:$0xff] %vm2245_vm2, %v2082_v32  ;;  %v2077_v52 = vadd.f32 %v3681_v35, %v2076_v34 }
 0x2a0   : > { %v3057_v60 = vpop.f32.mrf.mxu0 }
 0x2a1   : > { %2276 = vst.msk [vmem:[%s3688_s10 + $0xf0] sm:$0xff] %vm2245_vm2, %v2077_v52  ;;  %v2092_v9 = vadd.f32 %v3057_v60, %v3681_v35 }
 0x2a2   : > { %v2086_v49 = vpop.f32.mrf.mxu0 }
 0x2a3   : > { %2279 = vst.msk [vmem:[%s3688_s10 + $0x108] sm:$0xff] %vm2245_vm2, %v2092_v9  ;;  %v2087_v36 = vadd.f32 %v3681_v35, %v2086_v49 }
 0x2a4   : > { %v3060_v37 = vpop.f32.mrf.mxu0 }
 0x2a5   : > { %2278 = vst.msk [vmem:[%s3688_s10 + $0x100] sm:$0xff] %vm2245_vm2, %v2087_v36  ;;  %v2102_v38 = vadd.f32 %v3060_v37, %v3681_v35 }
 0x2a6   : > { %v2096_v8 = vpop.f32.mrf.mxu0 }
 0x2a7   : > { %2281 = vst.msk [vmem:[%s3688_s10 + $0x118] sm:$0xff] %vm2245_vm2, %v2102_v38  ;;  %v2097_v57 = vadd.f32 %v3681_v35, %v2096_v8 }
 0x2a8   : > { %v3063_v41 = vpop.f32.mrf.mxu0 }
 0x2a9   : > { %2280 = vst.msk [vmem:[%s3688_s10 + $0x110] sm:$0xff] %vm2245_vm2, %v2097_v57  ;;  %v2112_v42 = vadd.f32 %v3063_v41, %v3681_v35 }
 0x2aa   : > { %v2106_v44 = vpop.f32.mrf.mxu0 }
 0x2ab   : > { %2283 = vst.msk [vmem:[%s3688_s10 + $0x128] sm:$0xff] %vm2245_vm2, %v2112_v42  ;;  %v2107_v23 = vadd.f32 %v3681_v35, %v2106_v44 }
 0x2ac   : > { %v3066_v1 = vpop.f32.mrf.mxu0 }
 0x2ad   : > { %2282 = vst.msk [vmem:[%s3688_s10 + $0x120] sm:$0xff] %vm2245_vm2, %v2107_v23  ;;  %v2122_v45 = vadd.f32 %v3066_v1, %v3681_v35 }
 0x2ae   : > { %v2116_v46 = vpop.f32.mrf.mxu0 }
 0x2af   : > { %2285 = vst.msk [vmem:[%s3688_s10 + $0x138] sm:$0xff] %vm2245_vm2, %v2122_v45  ;;  %v2117_v47 = vadd.f32 %v3681_v35, %v2116_v46 }
 0x2b0   : > { %v3069_v40 = vpop.f32.mrf.mxu0 }
 0x2b1   : > { %2284 = vst.msk [vmem:[%s3688_s10 + $0x130] sm:$0xff] %vm2245_vm2, %v2117_v47  ;;  %v2132_v16 = vadd.f32 %v3069_v40, %v3681_v35 }
 0x2b2   : > { %v2126_v50 = vpop.f32.mrf.mxu0 }
 0x2b3   : > { %2287 = vst.msk [vmem:[%s3688_s10 + $0x148] sm:$0xff] %vm2245_vm2, %v2132_v16  ;;  %v2127_v51 = vadd.f32 %v3681_v35, %v2126_v50 }
 0x2b4   : > { %v3072_v53 = vpop.f32.mrf.mxu0 }
 0x2b5   : > { %2286 = vst.msk [vmem:[%s3688_s10 + $0x140] sm:$0xff] %vm2245_vm2, %v2127_v51  ;;  %v2142_v54 = vadd.f32 %v3072_v53, %v3681_v35 }
 0x2b6   : > { %v2136_v31 = vpop.f32.mrf.mxu0 }
 0x2b7   : > { %2289 = vst.msk [vmem:[%s3688_s10 + $0x158] sm:$0xff] %vm2245_vm2, %v2142_v54  ;;  %v2137_v55 = vadd.f32 %v3681_v35, %v2136_v31 }
 0x2b8   : > { %v3075_v56 = vpop.f32.mrf.mxu0 }
 0x2b9   : > { %2288 = vst.msk [vmem:[%s3688_s10 + $0x150] sm:$0xff] %vm2245_vm2, %v2137_v55  ;;  %v2152_v58 = vadd.f32 %v3075_v56, %v3681_v35 }
 0x2ba   : > { %v2146_v59 = vpop.f32.mrf.mxu0 }
 0x2bb   : > { %2291 = vst.msk [vmem:[%s3688_s10 + $0x168] sm:$0xff] %vm2245_vm2, %v2152_v58  ;;  %v2147_v48 = vadd.f32 %v3681_v35, %v2146_v59 }
 0x2bc   : > { %v3078_v61 = vpop.f32.mrf.mxu0 }
 0x2bd   : > { %2290 = vst.msk [vmem:[%s3688_s10 + $0x160] sm:$0xff] %vm2245_vm2, %v2147_v48  ;;  %v2162_v62 = vadd.f32 %v3078_v61, %v3681_v35 }
 0x2be   : > { %v2156_v63 = vpop.f32.mrf.mxu0 }
 0x2bf   : > { %2293 = vst.msk [vmem:[%s3688_s10 + $0x178] sm:$0xff] %vm2245_vm2, %v2162_v62  ;;  %v2157_v0 = vadd.f32 %v3681_v35, %v2156_v63 }
 0x2c0   : > { %v3081_v2 = vpop.f32.mrf.mxu0 }
 0x2c1   : > { %2292 = vst.msk [vmem:[%s3688_s10 + $0x170] sm:$0xff] %vm2245_vm2, %v2157_v0  ;;  %v2172_v3 = vadd.f32 %v3081_v2, %v3681_v35 }
 0x2c2   : > { %v2166_v4 = vpop.f32.mrf.mxu0 }
 0x2c3   : > { %2295 = vst.msk [vmem:[%s3688_s10 + $0x188] sm:$0xff] %vm2245_vm2, %v2172_v3  ;;  %v2167_v5 = vadd.f32 %v3681_v35, %v2166_v4 }
 0x2c4   : > { %v3084_v6 = vpop.f32.mrf.mxu0 }
 0x2c5   : > { %2294 = vst.msk [vmem:[%s3688_s10 + $0x180] sm:$0xff] %vm2245_vm2, %v2167_v5  ;;  %v2182_v7 = vadd.f32 %v3084_v6, %v3681_v35 }
 0x2c6   : > { %v2176_v10 = vpop.f32.mrf.mxu0 }
 0x2c7   : > { %2297 = vst.msk [vmem:[%s3688_s10 + $0x198] sm:$0xff] %vm2245_vm2, %v2182_v7  ;;  %v2177_v11 = vadd.f32 %v3681_v35, %v2176_v10 }
 0x2c8   : > { %v3087_v12 = vpop.f32.mrf.mxu0 }
 0x2c9   : > { %2296 = vst.msk [vmem:[%s3688_s10 + $0x190] sm:$0xff] %vm2245_vm2, %v2177_v11  ;;  %v2192_v13 = vadd.f32 %v3087_v12, %v3681_v35 }
 0x2ca   : > { %v2186_v14 = vpop.f32.mrf.mxu0 }
 0x2cb   : > { %2299 = vst.msk [vmem:[%s3688_s10 + $0x1a8] sm:$0xff] %vm2245_vm2, %v2192_v13  ;;  %v2187_v15 = vadd.f32 %v3681_v35, %v2186_v14 }
 0x2cc   : > { %v3090_v17 = vpop.f32.mrf.mxu0 }
 0x2cd   : > { %2298 = vst.msk [vmem:[%s3688_s10 + $0x1a0] sm:$0xff] %vm2245_vm2, %v2187_v15  ;;  %v2202_v18 = vadd.f32 %v3090_v17, %v3681_v35 }
 0x2ce   : > { %v2196_v19 = vpop.f32.mrf.mxu0 }
 0x2cf   : > { %2301 = vst.msk [vmem:[%s3688_s10 + $0x1b8] sm:$0xff] %vm2245_vm2, %v2202_v18  ;;  %v2197_v33 = vadd.f32 %v3681_v35, %v2196_v19 }
 0x2d0   : > { %v3093_v20 = vpop.f32.mrf.mxu0 }
 0x2d1   : > { %2300 = vst.msk [vmem:[%s3688_s10 + $0x1b0] sm:$0xff] %vm2245_vm2, %v2197_v33  ;;  %v2212_v21 = vadd.f32 %v3093_v20, %v3681_v35 }
 0x2d2   : > { %v2206_v22 = vpop.f32.mrf.mxu0 }
 0x2d3   : > { %2303 = vst.msk [vmem:[%s3688_s10 + $0x1c8] sm:$0xff] %vm2245_vm2, %v2212_v21  ;;  %v2207_v24 = vadd.f32 %v3681_v35, %v2206_v22 }
 0x2d4   : > { %v3096_v43 = vpop.f32.mrf.mxu0 }
 0x2d5   : > { %2302 = vst.msk [vmem:[%s3688_s10 + $0x1c0] sm:$0xff] %vm2245_vm2, %v2207_v24  ;;  %v2222_v25 = vadd.f32 %v3096_v43, %v3681_v35 }
 0x2d6   : > { %v2216_v29 = vpop.f32.mrf.mxu0 }
 0x2d7   : > { %2305 = vst.msk [vmem:[%s3688_s10 + $0x1d8] sm:$0xff] %vm2245_vm2, %v2222_v25  ;;  %v2217_v26 = vadd.f32 %v3681_v35, %v2216_v29 }
 0x2d8   : > { %v3099_v27 = vpop.f32.mrf.mxu0 }
 0x2d9   : > { %2304 = vst.msk [vmem:[%s3688_s10 + $0x1d0] sm:$0xff] %vm2245_vm2, %v2217_v26  ;;  %v2232_v28 = vadd.f32 %v3099_v27, %v3681_v35 }
 0x2da   : > { %v2226_v30 = vpop.f32.mrf.mxu0 }
 0x2db   : > { %2307 = vst.msk [vmem:[%s3688_s10 + $0x1e8] sm:$0xff] %vm2245_vm2, %v2232_v28  ;;  %v2227_v39 = vadd.f32 %v3681_v35, %v2226_v30 }
 0x2dc   : > { %v3102_v32 = vpop.f32.mrf.mxu0 }
 0x2dd   : > { %2306 = vst.msk [vmem:[%s3688_s10 + $0x1e0] sm:$0xff] %vm2245_vm2, %v2227_v39  ;;  %v2242_v34 = vadd.f32 %v3102_v32, %v3681_v35 }
 0x2de   : > { %v2236_v52 = vpop.f32.mrf.mxu0 }
 0x2df   : > { %2309 = vst.msk [vmem:[%s3688_s10 + $0x1f8] sm:$0xff] %vm2245_vm2, %v2242_v34  ;;  %v2237_v60 = vadd.f32 %v3681_v35, %v2236_v52 }
 0x2e1   : > { %2308 = vst.msk [vmem:[%s3688_s10 + $0x1f0] sm:$0xff] %vm2245_vm2, %v2237_v60 }
 0x2e2 PF: > { %s17_s24 = sadd.s32 1, %s3119_s24  }
 0x2e3   : > { %p14_p4 = scmp.ge.s32.totalorder %s17_s24, 4  }
 0x2e5   :  { %16 = sbr.rel (!%p14_p4) target bundleno = 1 (0x1), region = 78 }

</bundles_post_ra>
